<compile_context>
chip_gen: v6e
topology: v6e:2x2x1
jax: 0.10.0
libtpu: 0.0.40
codegen_flags: <defaults>
</compile_context>

<pallas_src>
import math
from functools import partial

import jax
import jax.numpy as jnp
from jax import lax
from jax.experimental import pallas as pl
from jax.experimental.pallas import tpu as pltpu


def _flava_attn_kernel(x_ref, wqkv_ref, bqkv_ref, ctx_ref, probs_ref,
                       q_scr, kT_scr, v_scr, *,
                       num_groups, heads_per_group, head_dim, hidden,
                       group_width, q_tile, scratch_dtype):
    # x_ref:     (1, S, H)                          current batch
    # wqkv_ref:  (H, 3H)    pre-transposed, pre-scaled [Wq^T*s | Wk^T | Wv^T]
    # bqkv_ref:  (1, 3H)    f32
    # ctx_ref:   (1, tq, gw)        one (q-tile, head-group) output block
    # probs_ref: (1, hpg, tq, S)    one head-group / q-tile probs block
    # q_scr:     (num_groups, S, gw)   persists across grid steps of a batch
    # kT_scr:    (num_groups, gw, S)
    # v_scr:     (num_groups, S, gw)
    g = pl.program_id(1)
    qt = pl.program_id(2)

    # ---- QKV projection: once per batch (first group, first q-tile) ----
    @pl.when((g == 0) & (qt == 0))
    def _project():
        x = x_ref[0]                                              # (S, H)
        qkv = jnp.dot(x, wqkv_ref[...],
                      preferred_element_type=jnp.float32) + bqkv_ref[0]
        # Scatter into 128-lane-aligned head-group slabs (static lane slices).
        for gg in range(num_groups):
            lo = gg * group_width
            q_scr[gg] = qkv[:, lo:lo + group_width].astype(scratch_dtype)
            k_grp = qkv[:, hidden + lo:hidden + lo + group_width]  # (S, gw)
            kT_scr[gg] = jnp.transpose(k_grp).astype(scratch_dtype)  # (gw, S)
            v_scr[gg] = qkv[:, 2 * hidden + lo:2 * hidden + lo + group_width
                            ].astype(scratch_dtype)

    # ---- Per (head-group, q-tile) attention ----
    row0 = pl.multiple_of(qt * q_tile, q_tile)
    q_slab = q_scr[g, pl.ds(row0, q_tile), :]                     # (tq, gw)
    kT_slab = kT_scr[g]                                           # (gw, S)
    v_slab = v_scr[g]                                             # (S, gw)

    ctx_parts = []
    for hh in range(heads_per_group):
        lo = hh * head_dim
        qh = q_slab[:, lo:lo + head_dim]                          # (tq, hd)
        kTh = kT_slab[lo:lo + head_dim, :]                        # (hd, S)
        vh = v_slab[:, lo:lo + head_dim]                          # (S, hd)

        # 1/sqrt(head_dim) is already folded into Wq/bq.
        scores = jnp.dot(qh, kTh,
                         preferred_element_type=jnp.float32)      # (tq, S)
        m = jnp.max(scores, axis=-1, keepdims=True)
        e = jnp.exp(scores - m)
        denom = jnp.sum(e, axis=-1, keepdims=True)
        # approx reciprocal -> EUP slot; probs rows sum to 1 within ~1e-3.
        probs = e * pl.reciprocal(denom, approx=True)             # (tq, S)

        probs_ref[0, hh] = probs.astype(probs_ref.dtype)
        ctx_parts.append(jnp.dot(probs.astype(scratch_dtype), vh,
                                 preferred_element_type=jnp.float32))

    # Lane-dense (tq, gw) context store for this (group, q-tile) block.
    ctx_ref[0] = jnp.concatenate(ctx_parts, axis=-1).astype(ctx_ref.dtype)


def _pick_heads_per_group(num_heads, head_dim):
    """Largest divisor d of num_heads with d*head_dim <= 128 and 128-aligned;
    falls back to all heads in one group (group width == hidden, always a
    legal block last-dim)."""
    candidates = [d for d in range(1, num_heads + 1)
                  if num_heads % d == 0 and d * head_dim <= 128
                  and (d * head_dim) % 128 == 0]
    return max(candidates) if candidates else num_heads


def _pick_query_tile(s, max_tile=256):
    if s <= max_tile:
        return s
    for t in range(max_tile, 7, -1):
        if s % t == 0 and t % 8 == 0:
            return t
    return s


def _padded_vmem_bytes(shape, dtype):
    """Bytes for a VMEM buffer including lane (128) and sublane padding."""
    itemsize = jnp.dtype(dtype).itemsize
    s = list(shape)
    if not s:
        return 4
    s[-1] = -(-s[-1] // 128) * 128
    if len(s) >= 2:
        sub = {4: 8, 2: 16, 1: 32}.get(itemsize, 8)
        s[-2] = -(-s[-2] // sub) * sub
    return math.prod(s) * itemsize


def flava_self_attention(hidden_states, wq, bq, wk, bk, wv, bv, num_heads,
                         *, use_bf16_matmul=True, probs_dtype=jnp.float32):
    """hidden_states: [B, S, H]; w*: [H, H] nn.Linear layout (out, in); b*: [H]."""
    B, S, H = hidden_states.shape
    assert H % num_heads == 0
    head_dim = H // num_heads
    scale = 1.0 / math.sqrt(head_dim)

    heads_per_group = _pick_heads_per_group(num_heads, head_dim)
    num_groups = num_heads // heads_per_group
    group_width = heads_per_group * head_dim
    q_tile = _pick_query_tile(S)
    num_q_tiles = S // q_tile

    # Fold the 1/sqrt(head_dim) score scale into the query projection, and
    # fuse QKV into one pre-transposed weight: x @ Wqkv = [xWq^T*s|xWk^T|xWv^T].
    wqkv_t = jnp.concatenate([(wq * scale).T, wk.T, wv.T], axis=1)   # (H, 3H)
    bqkv = jnp.concatenate([bq * scale, bk, bv]).reshape(1, 3 * H)   # (1, 3H)

    in_dtype = jnp.bfloat16 if use_bf16_matmul else jnp.float32
    x = hidden_states.astype(in_dtype)
    wqkv_t = wqkv_t.astype(in_dtype)
    bqkv = bqkv.astype(jnp.float32)

    kernel = partial(_flava_attn_kernel,
                     num_groups=num_groups, heads_per_group=heads_per_group,
                     head_dim=head_dim, hidden=H, group_width=group_width,
                     q_tile=q_tile, scratch_dtype=in_dtype)

    def working_set_bytes(weight_buffers):
        pb = _padded_vmem_bytes
        return (weight_buffers * (pb((H, 3 * H), in_dtype)
                                  + pb((1, 3 * H), jnp.float32))
                + 2 * pb((1, S, H), in_dtype)                          # x blocks
                + 2 * pb((1, q_tile, group_width), jnp.float32)        # ctx blocks
                + 2 * pb((1, heads_per_group, q_tile, S), probs_dtype)  # probs blocks
                + 2 * pb((num_groups, S, group_width), in_dtype)       # q, v scratch
                + pb((num_groups, group_width, S), in_dtype)           # k^T scratch
                + 2 * pb((S, 3 * H), jnp.float32))                     # projection temps

    def build(weight_buffer_count):
        wkw = ({} if weight_buffer_count is None
               else dict(pipeline_mode=pl.Buffered(weight_buffer_count)))
        nbuf = 2 if weight_buffer_count is None else weight_buffer_count
        vmem_limit = min(max(int(working_set_bytes(nbuf) * 1.5) + (4 << 20),
                             32 << 20), 100 << 20)
        grid_spec = pltpu.PrefetchScalarGridSpec(
            num_scalar_prefetch=0,
            grid=(B, num_groups, num_q_tiles),
            in_specs=[
                pl.BlockSpec((1, S, H), lambda b, g, qt: (b, 0, 0)),   # x
                pl.BlockSpec((H, 3 * H), lambda b, g, qt: (0, 0), **wkw),  # Wqkv^T
                pl.BlockSpec((1, 3 * H), lambda b, g, qt: (0, 0), **wkw),  # bqkv
            ],
            out_specs=[
                pl.BlockSpec((1, q_tile, group_width),                 # context
                             lambda b, g, qt: (b, qt, g)),
                pl.BlockSpec((1, heads_per_group, q_tile, S),          # probs
                             lambda b, g, qt: (b, g, qt, 0)),
            ],
            scratch_shapes=[
                pltpu.VMEM((num_groups, S, group_width), in_dtype),    # q
                pltpu.VMEM((num_groups, group_width, S), in_dtype),    # k^T
                pltpu.VMEM((num_groups, S, group_width), in_dtype),    # v
            ],
        )
        return pl.pallas_call(
            kernel,
            out_shape=(
                jax.ShapeDtypeStruct((B, S, H), jnp.float32),
                jax.ShapeDtypeStruct((B, num_heads, S, S), probs_dtype),
            ),
            grid_spec=grid_spec,
            compiler_params=pltpu.CompilerParams(
                dimension_semantics=("parallel", "arbitrary", "arbitrary"),
                vmem_limit_bytes=vmem_limit),
        )

    try:
        # Grid-invariant weights: single-buffered to halve their VMEM cost.
        ctx, probs = build(1)(x, wqkv_t, bqkv)
    except Exception:
        # Fallback if this Pallas build rejects pl.Buffered(1) on the main
        # pipeline: default double-buffering (correct, slightly more VMEM).
        ctx, probs = build(None)(x, wqkv_t, bqkv)
    return ctx, probs


def _reference(hidden_states, wq, bq, wk, bk, wv, bv, num_heads):
    B, S, H = hidden_states.shape
    hd = H // num_heads

    def split(x):  # (B,S,H) -> (B,nh,S,hd)
        return x.reshape(B, S, num_heads, hd).transpose(0, 2, 1, 3)

    q = split(hidden_states @ wq.T + bq)
    k = split(hidden_states @ wk.T + bk)
    v = split(hidden_states @ wv.T + bv)
    scores = jnp.einsum("bhqd,bhkd->bhqk", q, k) / math.sqrt(hd)
    probs = jax.nn.softmax(scores, axis=-1)
    ctx = jnp.einsum("bhqk,bhkd->bhqd", probs, v)
    ctx = ctx.transpose(0, 2, 1, 3).reshape(B, S, H)
    return ctx, probs


if __name__ == "__main__":
    # Small but module-consistent shapes: hidden=32, heads=4 (head_dim=8).
    B, S, H, NH = 2, 8, 32, 4

    key = jax.random.PRNGKey(0)
    ks = jax.random.split(key, 7)
    x = jax.random.normal(ks[0], (B, S, H), dtype=jnp.float32)
    # nn.Linear-style params: weight (out, in), bias (out,)
    wq = jax.random.normal(ks[1], (H, H), dtype=jnp.float32) * 0.05
    wk = jax.random.normal(ks[2], (H, H), dtype=jnp.float32) * 0.05
    wv = jax.random.normal(ks[3], (H, H), dtype=jnp.float32) * 0.05
    bq = jax.random.normal(ks[4], (H,), dtype=jnp.float32) * 0.05
    bk = jax.random.normal(ks[5], (H,), dtype=jnp.float32) * 0.05
    bv = jax.random.normal(ks[6], (H,), dtype=jnp.float32) * 0.05

    ctx_ref, probs_ref = _reference(x, wq, bq, wk, bk, wv, bv, NH)

    # f32 matmul path (tight parity with the PyTorch module).
    ctx, probs = flava_self_attention(x, wq, bq, wk, bk, wv, bv, NH,
                                      use_bf16_matmul=False)
    jax.block_until_ready((ctx, probs))
    assert jnp.allclose(ctx, ctx_ref, atol=5e-3, rtol=5e-3)
    assert jnp.allclose(probs, probs_ref, atol=5e-3, rtol=5e-3)

    # Default bf16 matmul-input path (f32 accumulation) — looser tolerance.
    ctx_bf, probs_bf = flava_self_attention(x, wq, bq, wk, bk, wv, bv, NH)
    jax.block_until_ready((ctx_bf, probs_bf))
    assert jnp.allclose(ctx_bf, ctx_ref, atol=2e-2, rtol=2e-2)
    assert jnp.allclose(probs_bf, probs_ref, atol=2e-2, rtol=2e-2)

    print("KERNEL_OK")
</pallas_src>

<mosaic_0001>
module attributes {stable_mosaic.version = 11 : i64} {
  func.func @_flava_attn_kernel(%arg0: i32, %arg1: i32, %arg2: i32, %arg3: memref<1x8x32xf32, #tpu.memory_space<vmem>>, %arg4: memref<32x96xf32, #tpu.memory_space<vmem>>, %arg5: memref<1x96xf32, #tpu.memory_space<vmem>>, %arg6: memref<1x8x32xf32, #tpu.memory_space<vmem>>, %arg7: memref<1x4x8x8xf32, #tpu.memory_space<vmem>>, %arg8: memref<1x8x32xf32, #tpu.memory_space<vmem>>, %arg9: memref<1x32x8xf32, #tpu.memory_space<vmem>>, %arg10: memref<1x8x32xf32, #tpu.memory_space<vmem>>) attributes {dimension_semantics = [#tpu.dimension_semantics<parallel>, #tpu.dimension_semantics<arbitrary>, #tpu.dimension_semantics<arbitrary>], iteration_bounds = array<i64: 2, 1, 1>, scalar_prefetch = 0 : i64, scratch_operands = 3 : i64, tpu.core_type = #tpu.core_type<tc>, window_params = [{transform_indices = @transform_0, window_bounds = array<i64: 1, 8, 32>}, {pipeline_mode = #tpu.pipeline_mode<synchronous>, transform_indices = @transform_1, window_bounds = array<i64: 32, 96>}, {pipeline_mode = #tpu.pipeline_mode<synchronous>, transform_indices = @transform_2, window_bounds = array<i64: 1, 96>}, {transform_indices = @transform_3, window_bounds = array<i64: 1, 8, 32>}, {transform_indices = @transform_4, window_bounds = array<i64: 1, 4, 8, 8>}]} {
    %c0_i32 = arith.constant 0 : i32
    %0 = arith.cmpi eq, %arg1, %c0_i32 : i32
    %c0_i32_0 = arith.constant 0 : i32
    %1 = arith.cmpi eq, %arg2, %c0_i32_0 : i32
    %2 = arith.andi %0, %1 : i1
    %3 = arith.extui %2 : i1 to i32
    %c0_i32_1 = arith.constant 0 : i32
    %4 = arith.cmpi ne, %3, %c0_i32_1 : i32
    scf.if %4 {
      %c0_37 = arith.constant 0 : index
      %c0_38 = arith.constant 0 : index
      %c0_39 = arith.constant 0 : index
      %93 = vector.load %arg3[%c0_37, %c0_38, %c0_39] : memref<1x8x32xf32, #tpu.memory_space<vmem>>, vector<1x8x32xf32>
      %94 = vector.shape_cast %93 : vector<1x8x32xf32> to vector<8x32xf32>
      %c0_40 = arith.constant 0 : index
      %c0_41 = arith.constant 0 : index
      %95 = vector.load %arg4[%c0_40, %c0_41] : memref<32x96xf32, #tpu.memory_space<vmem>>, vector<32x96xf32>
      %cst_42 = arith.constant dense<0.000000e+00> : vector<8x96xf32>
      %96 = tpu.matmul %94, %95, %cst_42 {dimension_numbers = #tpu.dot_dimension_numbers<[1], [0], [0], [1], [0, 0, 1, 1], [], []>} : vector<8x32xf32>, vector<32x96xf32>, vector<8x96xf32> -> vector<8x96xf32>
      %c0_43 = arith.constant 0 : index
      %c0_44 = arith.constant 0 : index
      %97 = vector.load %arg5[%c0_43, %c0_44] : memref<1x96xf32, #tpu.memory_space<vmem>>, vector<1x96xf32>
      %98 = vector.shape_cast %97 : vector<1x96xf32> to vector<96xf32>
      %99 = vector.shape_cast %98 : vector<96xf32> to vector<1x96xf32>
      %100 = vector.broadcast %99 : vector<1x96xf32> to vector<8x96xf32>
      %101 = arith.addf %96, %100 : vector<8x96xf32>
      %102 = vector.extract_strided_slice %101 {offsets = [0, 0], sizes = [8, 32], strides = [1, 1]} : vector<8x96xf32> to vector<8x32xf32>
      %c0_45 = arith.constant 0 : index
      %c0_46 = arith.constant 0 : index
      %c0_47 = arith.constant 0 : index
      %103 = vector.load %arg8[%c0_45, %c0_46, %c0_47] : memref<1x8x32xf32, #tpu.memory_space<vmem>>, vector<1x8x32xf32>
      %104 = vector.shape_cast %103 : vector<1x8x32xf32> to vector<8x32xf32>
      %105 = vector.shape_cast %102 : vector<8x32xf32> to vector<1x8x32xf32>
      tpu.vector_store %arg8[%c0_45, %c0_46, %c0_47], %105 {strides = array<i32>} : memref<1x8x32xf32, #tpu.memory_space<vmem>>, vector<1x8x32xf32>,
      %106 = vector.extract_strided_slice %101 {offsets = [0, 32], sizes = [8, 32], strides = [1, 1]} : vector<8x96xf32> to vector<8x32xf32>
      %107 = tpu.transpose %106, [1, 0] : vector<8x32xf32> -> vector<32x8xf32>
      %c0_48 = arith.constant 0 : index
      %c0_49 = arith.constant 0 : index
      %c0_50 = arith.constant 0 : index
      %108 = vector.load %arg9[%c0_48, %c0_49, %c0_50] : memref<1x32x8xf32, #tpu.memory_space<vmem>>, vector<1x32x8xf32>
      %109 = vector.shape_cast %108 : vector<1x32x8xf32> to vector<32x8xf32>
      %110 = vector.shape_cast %107 : vector<32x8xf32> to vector<1x32x8xf32>
      tpu.vector_store %arg9[%c0_48, %c0_49, %c0_50], %110 {strides = array<i32>} : memref<1x32x8xf32, #tpu.memory_space<vmem>>, vector<1x32x8xf32>,
      %111 = vector.extract_strided_slice %101 {offsets = [0, 64], sizes = [8, 32], strides = [1, 1]} : vector<8x96xf32> to vector<8x32xf32>
      %c0_51 = arith.constant 0 : index
      %c0_52 = arith.constant 0 : index
      %c0_53 = arith.constant 0 : index
      %112 = vector.load %arg10[%c0_51, %c0_52, %c0_53] : memref<1x8x32xf32, #tpu.memory_space<vmem>>, vector<1x8x32xf32>
      %113 = vector.shape_cast %112 : vector<1x8x32xf32> to vector<8x32xf32>
      %114 = vector.shape_cast %111 : vector<8x32xf32> to vector<1x8x32xf32>
      tpu.vector_store %arg10[%c0_51, %c0_52, %c0_53], %114 {strides = array<i32>} : memref<1x8x32xf32, #tpu.memory_space<vmem>>, vector<1x8x32xf32>,
    } else {
    }
    %c8_i32 = arith.constant 8 : i32
    %5 = arith.muli %arg2, %c8_i32 : i32
    %6 = tpu.assume_multiple %5, 8 : i32
    %7 = arith.index_cast %arg1 : i32 to index
    %8 = arith.index_cast %6 : i32 to index
    %c0 = arith.constant 0 : index
    %9 = vector.load %arg8[%7, %8, %c0] : memref<1x8x32xf32, #tpu.memory_space<vmem>>, vector<1x8x32xf32>
    %10 = vector.shape_cast %9 : vector<1x8x32xf32> to vector<8x32xf32>
    %11 = arith.index_cast %arg1 : i32 to index
    %c0_2 = arith.constant 0 : index
    %c0_3 = arith.constant 0 : index
    %12 = vector.load %arg9[%11, %c0_2, %c0_3] : memref<1x32x8xf32, #tpu.memory_space<vmem>>, vector<1x32x8xf32>
    %13 = vector.shape_cast %12 : vector<1x32x8xf32> to vector<32x8xf32>
    %14 = arith.index_cast %arg1 : i32 to index
    %c0_4 = arith.constant 0 : index
    %c0_5 = arith.constant 0 : index
    %15 = vector.load %arg10[%14, %c0_4, %c0_5] : memref<1x8x32xf32, #tpu.memory_space<vmem>>, vector<1x8x32xf32>
    %16 = vector.shape_cast %15 : vector<1x8x32xf32> to vector<8x32xf32>
    %17 = vector.extract_strided_slice %10 {offsets = [0, 0], sizes = [8, 8], strides = [1, 1]} : vector<8x32xf32> to vector<8x8xf32>
    %18 = vector.extract_strided_slice %13 {offsets = [0, 0], sizes = [8, 8], strides = [1, 1]} : vector<32x8xf32> to vector<8x8xf32>
    %19 = vector.extract_strided_slice %16 {offsets = [0, 0], sizes = [8, 8], strides = [1, 1]} : vector<8x32xf32> to vector<8x8xf32>
    %cst = arith.constant dense<0.000000e+00> : vector<8x8xf32>
    %20 = tpu.matmul %17, %18, %cst {dimension_numbers = #tpu.dot_dimension_numbers<[1], [0], [0], [1], [0, 0, 1, 1], [], []>} : vector<8x8xf32>, vector<8x8xf32>, vector<8x8xf32> -> vector<8x8xf32>
    %cst_6 = arith.constant dense<0xFF800000> : vector<8xf32>
    %21 = vector.multi_reduction <maximumf>, %20, %cst_6 [1] : vector<8x8xf32> to vector<8xf32>
    %22 = vector.shape_cast %21 : vector<8xf32> to vector<8x1xf32>
    %23 = vector.broadcast %22 : vector<8x1xf32> to vector<8x8xf32>
    %24 = arith.subf %20, %23 : vector<8x8xf32>
    %25 = math.exp %24 : vector<8x8xf32>
    %cst_7 = arith.constant dense<0.000000e+00> : vector<8xf32>
    %26 = vector.multi_reduction <add>, %25, %cst_7 [1] : vector<8x8xf32> to vector<8xf32>
    %27 = vector.shape_cast %26 : vector<8xf32> to vector<8x1xf32>
    %28 = tpu.reciprocal %27 {approx = true} : vector<8x1xf32> -> vector<8x1xf32>
    %29 = vector.broadcast %28 : vector<8x1xf32> to vector<8x8xf32>
    %30 = arith.mulf %25, %29 : vector<8x8xf32>
    %c0_8 = arith.constant 0 : index
    %c0_9 = arith.constant 0 : index
    %c0_10 = arith.constant 0 : index
    %c0_11 = arith.constant 0 : index
    %31 = vector.load %arg7[%c0_8, %c0_9, %c0_10, %c0_11] : memref<1x4x8x8xf32, #tpu.memory_space<vmem>>, vector<1x1x8x8xf32>
    %32 = vector.shape_cast %31 : vector<1x1x8x8xf32> to vector<8x8xf32>
    %33 = vector.shape_cast %30 : vector<8x8xf32> to vector<1x1x8x8xf32>
    tpu.vector_store %arg7[%c0_8, %c0_9, %c0_10, %c0_11], %33 {strides = array<i32>} : memref<1x4x8x8xf32, #tpu.memory_space<vmem>>, vector<1x1x8x8xf32>,
    %cst_12 = arith.constant dense<0.000000e+00> : vector<8x8xf32>
    %34 = tpu.matmul %30, %19, %cst_12 {dimension_numbers = #tpu.dot_dimension_numbers<[1], [0], [0], [1], [0, 0, 1, 1], [], []>} : vector<8x8xf32>, vector<8x8xf32>, vector<8x8xf32> -> vector<8x8xf32>
    %35 = vector.extract_strided_slice %10 {offsets = [0, 8], sizes = [8, 8], strides = [1, 1]} : vector<8x32xf32> to vector<8x8xf32>
    %36 = vector.extract_strided_slice %13 {offsets = [8, 0], sizes = [8, 8], strides = [1, 1]} : vector<32x8xf32> to vector<8x8xf32>
    %37 = vector.extract_strided_slice %16 {offsets = [0, 8], sizes = [8, 8], strides = [1, 1]} : vector<8x32xf32> to vector<8x8xf32>
    %cst_13 = arith.constant dense<0.000000e+00> : vector<8x8xf32>
    %38 = tpu.matmul %35, %36, %cst_13 {dimension_numbers = #tpu.dot_dimension_numbers<[1], [0], [0], [1], [0, 0, 1, 1], [], []>} : vector<8x8xf32>, vector<8x8xf32>, vector<8x8xf32> -> vector<8x8xf32>
    %cst_14 = arith.constant dense<0xFF800000> : vector<8xf32>
    %39 = vector.multi_reduction <maximumf>, %38, %cst_14 [1] : vector<8x8xf32> to vector<8xf32>
    %40 = vector.shape_cast %39 : vector<8xf32> to vector<8x1xf32>
    %41 = vector.broadcast %40 : vector<8x1xf32> to vector<8x8xf32>
    %42 = arith.subf %38, %41 : vector<8x8xf32>
    %43 = math.exp %42 : vector<8x8xf32>
    %cst_15 = arith.constant dense<0.000000e+00> : vector<8xf32>
    %44 = vector.multi_reduction <add>, %43, %cst_15 [1] : vector<8x8xf32> to vector<8xf32>
    %45 = vector.shape_cast %44 : vector<8xf32> to vector<8x1xf32>
    %46 = tpu.reciprocal %45 {approx = true} : vector<8x1xf32> -> vector<8x1xf32>
    %47 = vector.broadcast %46 : vector<8x1xf32> to vector<8x8xf32>
    %48 = arith.mulf %43, %47 : vector<8x8xf32>
    %c0_16 = arith.constant 0 : index
    %c1 = arith.constant 1 : index
    %c0_17 = arith.constant 0 : index
    %c0_18 = arith.constant 0 : index
    %49 = vector.load %arg7[%c0_16, %c1, %c0_17, %c0_18] : memref<1x4x8x8xf32, #tpu.memory_space<vmem>>, vector<1x1x8x8xf32>
    %50 = vector.shape_cast %49 : vector<1x1x8x8xf32> to vector<8x8xf32>
    %51 = vector.shape_cast %48 : vector<8x8xf32> to vector<1x1x8x8xf32>
    tpu.vector_store %arg7[%c0_16, %c1, %c0_17, %c0_18], %51 {strides = array<i32>} : memref<1x4x8x8xf32, #tpu.memory_space<vmem>>, vector<1x1x8x8xf32>,
    %cst_19 = arith.constant dense<0.000000e+00> : vector<8x8xf32>
    %52 = tpu.matmul %48, %37, %cst_19 {dimension_numbers = #tpu.dot_dimension_numbers<[1], [0], [0], [1], [0, 0, 1, 1], [], []>} : vector<8x8xf32>, vector<8x8xf32>, vector<8x8xf32> -> vector<8x8xf32>
    %53 = vector.extract_strided_slice %10 {offsets = [0, 16], sizes = [8, 8], strides = [1, 1]} : vector<8x32xf32> to vector<8x8xf32>
    %54 = vector.extract_strided_slice %13 {offsets = [16, 0], sizes = [8, 8], strides = [1, 1]} : vector<32x8xf32> to vector<8x8xf32>
    %55 = vector.extract_strided_slice %16 {offsets = [0, 16], sizes = [8, 8], strides = [1, 1]} : vector<8x32xf32> to vector<8x8xf32>
    %cst_20 = arith.constant dense<0.000000e+00> : vector<8x8xf32>
    %56 = tpu.matmul %53, %54, %cst_20 {dimension_numbers = #tpu.dot_dimension_numbers<[1], [0], [0], [1], [0, 0, 1, 1], [], []>} : vector<8x8xf32>, vector<8x8xf32>, vector<8x8xf32> -> vector<8x8xf32>
    %cst_21 = arith.constant dense<0xFF800000> : vector<8xf32>
    %57 = vector.multi_reduction <maximumf>, %56, %cst_21 [1] : vector<8x8xf32> to vector<8xf32>
    %58 = vector.shape_cast %57 : vector<8xf32> to vector<8x1xf32>
    %59 = vector.broadcast %58 : vector<8x1xf32> to vector<8x8xf32>
    %60 = arith.subf %56, %59 : vector<8x8xf32>
    %61 = math.exp %60 : vector<8x8xf32>
    %cst_22 = arith.constant dense<0.000000e+00> : vector<8xf32>
    %62 = vector.multi_reduction <add>, %61, %cst_22 [1] : vector<8x8xf32> to vector<8xf32>
    %63 = vector.shape_cast %62 : vector<8xf32> to vector<8x1xf32>
    %64 = tpu.reciprocal %63 {approx = true} : vector<8x1xf32> -> vector<8x1xf32>
    %65 = vector.broadcast %64 : vector<8x1xf32> to vector<8x8xf32>
    %66 = arith.mulf %61, %65 : vector<8x8xf32>
    %c0_23 = arith.constant 0 : index
    %c2 = arith.constant 2 : index
    %c0_24 = arith.constant 0 : index
    %c0_25 = arith.constant 0 : index
    %67 = vector.load %arg7[%c0_23, %c2, %c0_24, %c0_25] : memref<1x4x8x8xf32, #tpu.memory_space<vmem>>, vector<1x1x8x8xf32>
    %68 = vector.shape_cast %67 : vector<1x1x8x8xf32> to vector<8x8xf32>
    %69 = vector.shape_cast %66 : vector<8x8xf32> to vector<1x1x8x8xf32>
    tpu.vector_store %arg7[%c0_23, %c2, %c0_24, %c0_25], %69 {strides = array<i32>} : memref<1x4x8x8xf32, #tpu.memory_space<vmem>>, vector<1x1x8x8xf32>,
    %cst_26 = arith.constant dense<0.000000e+00> : vector<8x8xf32>
    %70 = tpu.matmul %66, %55, %cst_26 {dimension_numbers = #tpu.dot_dimension_numbers<[1], [0], [0], [1], [0, 0, 1, 1], [], []>} : vector<8x8xf32>, vector<8x8xf32>, vector<8x8xf32> -> vector<8x8xf32>
    %71 = vector.extract_strided_slice %10 {offsets = [0, 24], sizes = [8, 8], strides = [1, 1]} : vector<8x32xf32> to vector<8x8xf32>
    %72 = vector.extract_strided_slice %13 {offsets = [24, 0], sizes = [8, 8], strides = [1, 1]} : vector<32x8xf32> to vector<8x8xf32>
    %73 = vector.extract_strided_slice %16 {offsets = [0, 24], sizes = [8, 8], strides = [1, 1]} : vector<8x32xf32> to vector<8x8xf32>
    %cst_27 = arith.constant dense<0.000000e+00> : vector<8x8xf32>
    %74 = tpu.matmul %71, %72, %cst_27 {dimension_numbers = #tpu.dot_dimension_numbers<[1], [0], [0], [1], [0, 0, 1, 1], [], []>} : vector<8x8xf32>, vector<8x8xf32>, vector<8x8xf32> -> vector<8x8xf32>
    %cst_28 = arith.constant dense<0xFF800000> : vector<8xf32>
    %75 = vector.multi_reduction <maximumf>, %74, %cst_28 [1] : vector<8x8xf32> to vector<8xf32>
    %76 = vector.shape_cast %75 : vector<8xf32> to vector<8x1xf32>
    %77 = vector.broadcast %76 : vector<8x1xf32> to vector<8x8xf32>
    %78 = arith.subf %74, %77 : vector<8x8xf32>
    %79 = math.exp %78 : vector<8x8xf32>
    %cst_29 = arith.constant dense<0.000000e+00> : vector<8xf32>
    %80 = vector.multi_reduction <add>, %79, %cst_29 [1] : vector<8x8xf32> to vector<8xf32>
    %81 = vector.shape_cast %80 : vector<8xf32> to vector<8x1xf32>
    %82 = tpu.reciprocal %81 {approx = true} : vector<8x1xf32> -> vector<8x1xf32>
    %83 = vector.broadcast %82 : vector<8x1xf32> to vector<8x8xf32>
    %84 = arith.mulf %79, %83 : vector<8x8xf32>
    %c0_30 = arith.constant 0 : index
    %c3 = arith.constant 3 : index
    %c0_31 = arith.constant 0 : index
    %c0_32 = arith.constant 0 : index
    %85 = vector.load %arg7[%c0_30, %c3, %c0_31, %c0_32] : memref<1x4x8x8xf32, #tpu.memory_space<vmem>>, vector<1x1x8x8xf32>
    %86 = vector.shape_cast %85 : vector<1x1x8x8xf32> to vector<8x8xf32>
    %87 = vector.shape_cast %84 : vector<8x8xf32> to vector<1x1x8x8xf32>
    tpu.vector_store %arg7[%c0_30, %c3, %c0_31, %c0_32], %87 {strides = array<i32>} : memref<1x4x8x8xf32, #tpu.memory_space<vmem>>, vector<1x1x8x8xf32>,
    %cst_33 = arith.constant dense<0.000000e+00> : vector<8x8xf32>
    %88 = tpu.matmul %84, %73, %cst_33 {dimension_numbers = #tpu.dot_dimension_numbers<[1], [0], [0], [1], [0, 0, 1, 1], [], []>} : vector<8x8xf32>, vector<8x8xf32>, vector<8x8xf32> -> vector<8x8xf32>
    %89 = tpu.concatenate %34, %52, %70, %88 in 1 : vector<8x8xf32>, vector<8x8xf32>, vector<8x8xf32>, vector<8x8xf32> -> vector<8x32xf32>
    %c0_34 = arith.constant 0 : index
    %c0_35 = arith.constant 0 : index
    %c0_36 = arith.constant 0 : index
    %90 = vector.load %arg6[%c0_34, %c0_35, %c0_36] : memref<1x8x32xf32, #tpu.memory_space<vmem>>, vector<1x8x32xf32>
    %91 = vector.shape_cast %90 : vector<1x8x32xf32> to vector<8x32xf32>
    %92 = vector.shape_cast %89 : vector<8x32xf32> to vector<1x8x32xf32>
    tpu.vector_store %arg6[%c0_34, %c0_35, %c0_36], %92 {strides = array<i32>} : memref<1x8x32xf32, #tpu.memory_space<vmem>>, vector<1x8x32xf32>,
    return
  }
  func.func @transform_0(%arg0: i32, %arg1: i32, %arg2: i32) -> (i32, i32, i32) {
    %c0_i32 = arith.constant 0 : i32
    %c0_i32_0 = arith.constant 0 : i32
    %c0_i32_1 = arith.constant 0 : i32
    return %arg0, %c0_i32, %c0_i32_0 : i32, i32, i32
  }
  func.func @transform_1(%arg0: i32, %arg1: i32, %arg2: i32) -> (i32, i32) {
    %c0_i32 = arith.constant 0 : i32
    %c0_i32_0 = arith.constant 0 : i32
    %c0_i32_1 = arith.constant 0 : i32
    return %c0_i32, %c0_i32_0 : i32, i32
  }
  func.func @transform_2(%arg0: i32, %arg1: i32, %arg2: i32) -> (i32, i32) {
    %c0_i32 = arith.constant 0 : i32
    %c0_i32_0 = arith.constant 0 : i32
    %c0_i32_1 = arith.constant 0 : i32
    return %c0_i32, %c0_i32_0 : i32, i32
  }
  func.func @transform_3(%arg0: i32, %arg1: i32, %arg2: i32) -> (i32, i32, i32) {
    %c0_i32 = arith.constant 0 : i32
    return %arg0, %arg2, %arg1 : i32, i32, i32
  }
  func.func @transform_4(%arg0: i32, %arg1: i32, %arg2: i32) -> (i32, i32, i32, i32) {
    %c0_i32 = arith.constant 0 : i32
    %c0_i32_0 = arith.constant 0 : i32
    return %arg0, %arg1, %arg2, %c0_i32 : i32, i32, i32, i32
  }
}

module attributes {stable_mosaic.version = 11 : i64} {
  func.func @_flava_attn_kernel(%arg0: i32, %arg1: i32, %arg2: i32, %arg3: memref<1x8x32xf32, #tpu.memory_space<vmem>>, %arg4: memref<32x96xf32, #tpu.memory_space<vmem>>, %arg5: memref<1x96xf32, #tpu.memory_space<vmem>>, %arg6: memref<1x8x32xf32, #tpu.memory_space<vmem>>, %arg7: memref<1x4x8x8xf32, #tpu.memory_space<vmem>>, %arg8: memref<1x8x32xf32, #tpu.memory_space<vmem>>, %arg9: memref<1x32x8xf32, #tpu.memory_space<vmem>>, %arg10: memref<1x8x32xf32, #tpu.memory_space<vmem>>) attributes {dimension_semantics = [#tpu.dimension_semantics<parallel>, #tpu.dimension_semantics<arbitrary>, #tpu.dimension_semantics<arbitrary>], iteration_bounds = array<i64: 2, 1, 1>, scalar_prefetch = 0 : i64, scratch_operands = 3 : i64, tpu.core_type = #tpu.core_type<tc>, window_params = [{transform_indices = @transform_0, window_bounds = array<i64: 1, 8, 32>}, {pipeline_mode = #tpu.pipeline_mode<synchronous>, transform_indices = @transform_1, window_bounds = array<i64: 32, 96>}, {pipeline_mode = #tpu.pipeline_mode<synchronous>, transform_indices = @transform_2, window_bounds = array<i64: 1, 96>}, {transform_indices = @transform_3, window_bounds = array<i64: 1, 8, 32>}, {transform_indices = @transform_4, window_bounds = array<i64: 1, 4, 8, 8>}]} {
    %c0_i32 = arith.constant 0 : i32
    %0 = arith.cmpi eq, %arg1, %c0_i32 : i32
    %c0_i32_0 = arith.constant 0 : i32
    %1 = arith.cmpi eq, %arg2, %c0_i32_0 : i32
    %2 = arith.andi %0, %1 : i1
    %3 = arith.extui %2 : i1 to i32
    %c0_i32_1 = arith.constant 0 : i32
    %4 = arith.cmpi ne, %3, %c0_i32_1 : i32
    scf.if %4 {
      %c0_37 = arith.constant 0 : index
      %c0_38 = arith.constant 0 : index
      %c0_39 = arith.constant 0 : index
      %93 = vector.load %arg3[%c0_37, %c0_38, %c0_39] : memref<1x8x32xf32, #tpu.memory_space<vmem>>, vector<1x8x32xf32>
      %94 = vector.shape_cast %93 : vector<1x8x32xf32> to vector<8x32xf32>
      %c0_40 = arith.constant 0 : index
      %c0_41 = arith.constant 0 : index
      %95 = vector.load %arg4[%c0_40, %c0_41] : memref<32x96xf32, #tpu.memory_space<vmem>>, vector<32x96xf32>
      %cst_42 = arith.constant dense<0.000000e+00> : vector<8x96xf32>
      %96 = tpu.matmul %94, %95, %cst_42 {dimension_numbers = #tpu.dot_dimension_numbers<[1], [0], [0], [1], [0, 0, 1, 1], [], []>} : vector<8x32xf32>, vector<32x96xf32>, vector<8x96xf32> -> vector<8x96xf32>
      %c0_43 = arith.constant 0 : index
      %c0_44 = arith.constant 0 : index
      %97 = vector.load %arg5[%c0_43, %c0_44] : memref<1x96xf32, #tpu.memory_space<vmem>>, vector<1x96xf32>
      %98 = vector.shape_cast %97 : vector<1x96xf32> to vector<96xf32>
      %99 = vector.shape_cast %98 : vector<96xf32> to vector<1x96xf32>
      %100 = vector.broadcast %99 : vector<1x96xf32> to vector<8x96xf32>
      %101 = arith.addf %96, %100 : vector<8x96xf32>
      %102 = vector.extract_strided_slice %101 {offsets = [0, 0], sizes = [8, 32], strides = [1, 1]} : vector<8x96xf32> to vector<8x32xf32>
      %c0_45 = arith.constant 0 : index
      %c0_46 = arith.constant 0 : index
      %c0_47 = arith.constant 0 : index
      %103 = vector.load %arg8[%c0_45, %c0_46, %c0_47] : memref<1x8x32xf32, #tpu.memory_space<vmem>>, vector<1x8x32xf32>
      %104 = vector.shape_cast %103 : vector<1x8x32xf32> to vector<8x32xf32>
      %105 = vector.shape_cast %102 : vector<8x32xf32> to vector<1x8x32xf32>
      tpu.vector_store %arg8[%c0_45, %c0_46, %c0_47], %105 {strides = array<i32>} : memref<1x8x32xf32, #tpu.memory_space<vmem>>, vector<1x8x32xf32>,
      %106 = vector.extract_strided_slice %101 {offsets = [0, 32], sizes = [8, 32], strides = [1, 1]} : vector<8x96xf32> to vector<8x32xf32>
      %107 = tpu.transpose %106, [1, 0] : vector<8x32xf32> -> vector<32x8xf32>
      %c0_48 = arith.constant 0 : index
      %c0_49 = arith.constant 0 : index
      %c0_50 = arith.constant 0 : index
      %108 = vector.load %arg9[%c0_48, %c0_49, %c0_50] : memref<1x32x8xf32, #tpu.memory_space<vmem>>, vector<1x32x8xf32>
      %109 = vector.shape_cast %108 : vector<1x32x8xf32> to vector<32x8xf32>
      %110 = vector.shape_cast %107 : vector<32x8xf32> to vector<1x32x8xf32>
      tpu.vector_store %arg9[%c0_48, %c0_49, %c0_50], %110 {strides = array<i32>} : memref<1x32x8xf32, #tpu.memory_space<vmem>>, vector<1x32x8xf32>,
      %111 = vector.extract_strided_slice %101 {offsets = [0, 64], sizes = [8, 32], strides = [1, 1]} : vector<8x96xf32> to vector<8x32xf32>
      %c0_51 = arith.constant 0 : index
      %c0_52 = arith.constant 0 : index
      %c0_53 = arith.constant 0 : index
      %112 = vector.load %arg10[%c0_51, %c0_52, %c0_53] : memref<1x8x32xf32, #tpu.memory_space<vmem>>, vector<1x8x32xf32>
      %113 = vector.shape_cast %112 : vector<1x8x32xf32> to vector<8x32xf32>
      %114 = vector.shape_cast %111 : vector<8x32xf32> to vector<1x8x32xf32>
      tpu.vector_store %arg10[%c0_51, %c0_52, %c0_53], %114 {strides = array<i32>} : memref<1x8x32xf32, #tpu.memory_space<vmem>>, vector<1x8x32xf32>,
    } else {
    }
    %c8_i32 = arith.constant 8 : i32
    %5 = arith.muli %arg2, %c8_i32 : i32
    %6 = tpu.assume_multiple %5, 8 : i32
    %7 = arith.index_cast %arg1 : i32 to index
    %8 = arith.index_cast %6 : i32 to index
    %c0 = arith.constant 0 : index
    %9 = vector.load %arg8[%7, %8, %c0] : memref<1x8x32xf32, #tpu.memory_space<vmem>>, vector<1x8x32xf32>
    %10 = vector.shape_cast %9 : vector<1x8x32xf32> to vector<8x32xf32>
    %11 = arith.index_cast %arg1 : i32 to index
    %c0_2 = arith.constant 0 : index
    %c0_3 = arith.constant 0 : index
    %12 = vector.load %arg9[%11, %c0_2, %c0_3] : memref<1x32x8xf32, #tpu.memory_space<vmem>>, vector<1x32x8xf32>
    %13 = vector.shape_cast %12 : vector<1x32x8xf32> to vector<32x8xf32>
    %14 = arith.index_cast %arg1 : i32 to index
    %c0_4 = arith.constant 0 : index
    %c0_5 = arith.constant 0 : index
    %15 = vector.load %arg10[%14, %c0_4, %c0_5] : memref<1x8x32xf32, #tpu.memory_space<vmem>>, vector<1x8x32xf32>
    %16 = vector.shape_cast %15 : vector<1x8x32xf32> to vector<8x32xf32>
    %17 = vector.extract_strided_slice %10 {offsets = [0, 0], sizes = [8, 8], strides = [1, 1]} : vector<8x32xf32> to vector<8x8xf32>
    %18 = vector.extract_strided_slice %13 {offsets = [0, 0], sizes = [8, 8], strides = [1, 1]} : vector<32x8xf32> to vector<8x8xf32>
    %19 = vector.extract_strided_slice %16 {offsets = [0, 0], sizes = [8, 8], strides = [1, 1]} : vector<8x32xf32> to vector<8x8xf32>
    %cst = arith.constant dense<0.000000e+00> : vector<8x8xf32>
    %20 = tpu.matmul %17, %18, %cst {dimension_numbers = #tpu.dot_dimension_numbers<[1], [0], [0], [1], [0, 0, 1, 1], [], []>} : vector<8x8xf32>, vector<8x8xf32>, vector<8x8xf32> -> vector<8x8xf32>
    %cst_6 = arith.constant dense<0xFF800000> : vector<8xf32>
    %21 = vector.multi_reduction <maximumf>, %20, %cst_6 [1] : vector<8x8xf32> to vector<8xf32>
    %22 = vector.shape_cast %21 : vector<8xf32> to vector<8x1xf32>
    %23 = vector.broadcast %22 : vector<8x1xf32> to vector<8x8xf32>
    %24 = arith.subf %20, %23 : vector<8x8xf32>
    %25 = math.exp %24 : vector<8x8xf32>
    %cst_7 = arith.constant dense<0.000000e+00> : vector<8xf32>
    %26 = vector.multi_reduction <add>, %25, %cst_7 [1] : vector<8x8xf32> to vector<8xf32>
    %27 = vector.shape_cast %26 : vector<8xf32> to vector<8x1xf32>
    %28 = tpu.reciprocal %27 {approx = true} : vector<8x1xf32> -> vector<8x1xf32>
    %29 = vector.broadcast %28 : vector<8x1xf32> to vector<8x8xf32>
    %30 = arith.mulf %25, %29 : vector<8x8xf32>
    %c0_8 = arith.constant 0 : index
    %c0_9 = arith.constant 0 : index
    %c0_10 = arith.constant 0 : index
    %c0_11 = arith.constant 0 : index
    %31 = vector.load %arg7[%c0_8, %c0_9, %c0_10, %c0_11] : memref<1x4x8x8xf32, #tpu.memory_space<vmem>>, vector<1x1x8x8xf32>
    %32 = vector.shape_cast %31 : vector<1x1x8x8xf32> to vector<8x8xf32>
    %33 = vector.shape_cast %30 : vector<8x8xf32> to vector<1x1x8x8xf32>
    tpu.vector_store %arg7[%c0_8, %c0_9, %c0_10, %c0_11], %33 {strides = array<i32>} : memref<1x4x8x8xf32, #tpu.memory_space<vmem>>, vector<1x1x8x8xf32>,
    %cst_12 = arith.constant dense<0.000000e+00> : vector<8x8xf32>
    %34 = tpu.matmul %30, %19, %cst_12 {dimension_numbers = #tpu.dot_dimension_numbers<[1], [0], [0], [1], [0, 0, 1, 1], [], []>} : vector<8x8xf32>, vector<8x8xf32>, vector<8x8xf32> -> vector<8x8xf32>
    %35 = vector.extract_strided_slice %10 {offsets = [0, 8], sizes = [8, 8], strides = [1, 1]} : vector<8x32xf32> to vector<8x8xf32>
    %36 = vector.extract_strided_slice %13 {offsets = [8, 0], sizes = [8, 8], strides = [1, 1]} : vector<32x8xf32> to vector<8x8xf32>
    %37 = vector.extract_strided_slice %16 {offsets = [0, 8], sizes = [8, 8], strides = [1, 1]} : vector<8x32xf32> to vector<8x8xf32>
    %cst_13 = arith.constant dense<0.000000e+00> : vector<8x8xf32>
    %38 = tpu.matmul %35, %36, %cst_13 {dimension_numbers = #tpu.dot_dimension_numbers<[1], [0], [0], [1], [0, 0, 1, 1], [], []>} : vector<8x8xf32>, vector<8x8xf32>, vector<8x8xf32> -> vector<8x8xf32>
    %cst_14 = arith.constant dense<0xFF800000> : vector<8xf32>
    %39 = vector.multi_reduction <maximumf>, %38, %cst_14 [1] : vector<8x8xf32> to vector<8xf32>
    %40 = vector.shape_cast %39 : vector<8xf32> to vector<8x1xf32>
    %41 = vector.broadcast %40 : vector<8x1xf32> to vector<8x8xf32>
    %42 = arith.subf %38, %41 : vector<8x8xf32>
    %43 = math.exp %42 : vector<8x8xf32>
    %cst_15 = arith.constant dense<0.000000e+00> : vector<8xf32>
    %44 = vector.multi_reduction <add>, %43, %cst_15 [1] : vector<8x8xf32> to vector<8xf32>
    %45 = vector.shape_cast %44 : vector<8xf32> to vector<8x1xf32>
    %46 = tpu.reciprocal %45 {approx = true} : vector<8x1xf32> -> vector<8x1xf32>
    %47 = vector.broadcast %46 : vector<8x1xf32> to vector<8x8xf32>
    %48 = arith.mulf %43, %47 : vector<8x8xf32>
    %c0_16 = arith.constant 0 : index
    %c1 = arith.constant 1 : index
    %c0_17 = arith.constant 0 : index
    %c0_18 = arith.constant 0 : index
    %49 = vector.load %arg7[%c0_16, %c1, %c0_17, %c0_18] : memref<1x4x8x8xf32, #tpu.memory_space<vmem>>, vector<1x1x8x8xf32>
    %50 = vector.shape_cast %49 : vector<1x1x8x8xf32> to vector<8x8xf32>
    %51 = vector.shape_cast %48 : vector<8x8xf32> to vector<1x1x8x8xf32>
    tpu.vector_store %arg7[%c0_16, %c1, %c0_17, %c0_18], %51 {strides = array<i32>} : memref<1x4x8x8xf32, #tpu.memory_space<vmem>>, vector<1x1x8x8xf32>,
    %cst_19 = arith.constant dense<0.000000e+00> : vector<8x8xf32>
    %52 = tpu.matmul %48, %37, %cst_19 {dimension_numbers = #tpu.dot_dimension_numbers<[1], [0], [0], [1], [0, 0, 1, 1], [], []>} : vector<8x8xf32>, vector<8x8xf32>, vector<8x8xf32> -> vector<8x8xf32>
    %53 = vector.extract_strided_slice %10 {offsets = [0, 16], sizes = [8, 8], strides = [1, 1]} : vector<8x32xf32> to vector<8x8xf32>
    %54 = vector.extract_strided_slice %13 {offsets = [16, 0], sizes = [8, 8], strides = [1, 1]} : vector<32x8xf32> to vector<8x8xf32>
    %55 = vector.extract_strided_slice %16 {offsets = [0, 16], sizes = [8, 8], strides = [1, 1]} : vector<8x32xf32> to vector<8x8xf32>
    %cst_20 = arith.constant dense<0.000000e+00> : vector<8x8xf32>
    %56 = tpu.matmul %53, %54, %cst_20 {dimension_numbers = #tpu.dot_dimension_numbers<[1], [0], [0], [1], [0, 0, 1, 1], [], []>} : vector<8x8xf32>, vector<8x8xf32>, vector<8x8xf32> -> vector<8x8xf32>
    %cst_21 = arith.constant dense<0xFF800000> : vector<8xf32>
    %57 = vector.multi_reduction <maximumf>, %56, %cst_21 [1] : vector<8x8xf32> to vector<8xf32>
    %58 = vector.shape_cast %57 : vector<8xf32> to vector<8x1xf32>
    %59 = vector.broadcast %58 : vector<8x1xf32> to vector<8x8xf32>
    %60 = arith.subf %56, %59 : vector<8x8xf32>
    %61 = math.exp %60 : vector<8x8xf32>
    %cst_22 = arith.constant dense<0.000000e+00> : vector<8xf32>
    %62 = vector.multi_reduction <add>, %61, %cst_22 [1] : vector<8x8xf32> to vector<8xf32>
    %63 = vector.shape_cast %62 : vector<8xf32> to vector<8x1xf32>
    %64 = tpu.reciprocal %63 {approx = true} : vector<8x1xf32> -> vector<8x1xf32>
    %65 = vector.broadcast %64 : vector<8x1xf32> to vector<8x8xf32>
    %66 = arith.mulf %61, %65 : vector<8x8xf32>
    %c0_23 = arith.constant 0 : index
    %c2 = arith.constant 2 : index
    %c0_24 = arith.constant 0 : index
    %c0_25 = arith.constant 0 : index
    %67 = vector.load %arg7[%c0_23, %c2, %c0_24, %c0_25] : memref<1x4x8x8xf32, #tpu.memory_space<vmem>>, vector<1x1x8x8xf32>
    %68 = vector.shape_cast %67 : vector<1x1x8x8xf32> to vector<8x8xf32>
    %69 = vector.shape_cast %66 : vector<8x8xf32> to vector<1x1x8x8xf32>
    tpu.vector_store %arg7[%c0_23, %c2, %c0_24, %c0_25], %69 {strides = array<i32>} : memref<1x4x8x8xf32, #tpu.memory_space<vmem>>, vector<1x1x8x8xf32>,
    %cst_26 = arith.constant dense<0.000000e+00> : vector<8x8xf32>
    %70 = tpu.matmul %66, %55, %cst_26 {dimension_numbers = #tpu.dot_dimension_numbers<[1], [0], [0], [1], [0, 0, 1, 1], [], []>} : vector<8x8xf32>, vector<8x8xf32>, vector<8x8xf32> -> vector<8x8xf32>
    %71 = vector.extract_strided_slice %10 {offsets = [0, 24], sizes = [8, 8], strides = [1, 1]} : vector<8x32xf32> to vector<8x8xf32>
    %72 = vector.extract_strided_slice %13 {offsets = [24, 0], sizes = [8, 8], strides = [1, 1]} : vector<32x8xf32> to vector<8x8xf32>
    %73 = vector.extract_strided_slice %16 {offsets = [0, 24], sizes = [8, 8], strides = [1, 1]} : vector<8x32xf32> to vector<8x8xf32>
    %cst_27 = arith.constant dense<0.000000e+00> : vector<8x8xf32>
    %74 = tpu.matmul %71, %72, %cst_27 {dimension_numbers = #tpu.dot_dimension_numbers<[1], [0], [0], [1], [0, 0, 1, 1], [], []>} : vector<8x8xf32>, vector<8x8xf32>, vector<8x8xf32> -> vector<8x8xf32>
    %cst_28 = arith.constant dense<0xFF800000> : vector<8xf32>
    %75 = vector.multi_reduction <maximumf>, %74, %cst_28 [1] : vector<8x8xf32> to vector<8xf32>
    %76 = vector.shape_cast %75 : vector<8xf32> to vector<8x1xf32>
    %77 = vector.broadcast %76 : vector<8x1xf32> to vector<8x8xf32>
    %78 = arith.subf %74, %77 : vector<8x8xf32>
    %79 = math.exp %78 : vector<8x8xf32>
    %cst_29 = arith.constant dense<0.000000e+00> : vector<8xf32>
    %80 = vector.multi_reduction <add>, %79, %cst_29 [1] : vector<8x8xf32> to vector<8xf32>
    %81 = vector.shape_cast %80 : vector<8xf32> to vector<8x1xf32>
    %82 = tpu.reciprocal %81 {approx = true} : vector<8x1xf32> -> vector<8x1xf32>
    %83 = vector.broadcast %82 : vector<8x1xf32> to vector<8x8xf32>
    %84 = arith.mulf %79, %83 : vector<8x8xf32>
    %c0_30 = arith.constant 0 : index
    %c3 = arith.constant 3 : index
    %c0_31 = arith.constant 0 : index
    %c0_32 = arith.constant 0 : index
    %85 = vector.load %arg7[%c0_30, %c3, %c0_31, %c0_32] : memref<1x4x8x8xf32, #tpu.memory_space<vmem>>, vector<1x1x8x8xf32>
    %86 = vector.shape_cast %85 : vector<1x1x8x8xf32> to vector<8x8xf32>
    %87 = vector.shape_cast %84 : vector<8x8xf32> to vector<1x1x8x8xf32>
    tpu.vector_store %arg7[%c0_30, %c3, %c0_31, %c0_32], %87 {strides = array<i32>} : memref<1x4x8x8xf32, #tpu.memory_space<vmem>>, vector<1x1x8x8xf32>,
    %cst_33 = arith.constant dense<0.000000e+00> : vector<8x8xf32>
    %88 = tpu.matmul %84, %73, %cst_33 {dimension_numbers = #tpu.dot_dimension_numbers<[1], [0], [0], [1], [0, 0, 1, 1], [], []>} : vector<8x8xf32>, vector<8x8xf32>, vector<8x8xf32> -> vector<8x8xf32>
    %89 = tpu.concatenate %34, %52, %70, %88 in 1 : vector<8x8xf32>, vector<8x8xf32>, vector<8x8xf32>, vector<8x8xf32> -> vector<8x32xf32>
    %c0_34 = arith.constant 0 : index
    %c0_35 = arith.constant 0 : index
    %c0_36 = arith.constant 0 : index
    %90 = vector.load %arg6[%c0_34, %c0_35, %c0_36] : memref<1x8x32xf32, #tpu.memory_space<vmem>>, vector<1x8x32xf32>
    %91 = vector.shape_cast %90 : vector<1x8x32xf32> to vector<8x32xf32>
    %92 = vector.shape_cast %89 : vector<8x32xf32> to vector<1x8x32xf32>
    tpu.vector_store %arg6[%c0_34, %c0_35, %c0_36], %92 {strides = array<i32>} : memref<1x8x32xf32, #tpu.memory_space<vmem>>, vector<1x8x32xf32>,
    return
  }
  func.func @transform_0(%arg0: i32, %arg1: i32, %arg2: i32) -> (i32, i32, i32) {
    %c0_i32 = arith.constant 0 : i32
    %c0_i32_0 = arith.constant 0 : i32
    %c0_i32_1 = arith.constant 0 : i32
    return %arg0, %c0_i32, %c0_i32_0 : i32, i32, i32
  }
  func.func @transform_1(%arg0: i32, %arg1: i32, %arg2: i32) -> (i32, i32) {
    %c0_i32 = arith.constant 0 : i32
    %c0_i32_0 = arith.constant 0 : i32
    %c0_i32_1 = arith.constant 0 : i32
    return %c0_i32, %c0_i32_0 : i32, i32
  }
  func.func @transform_2(%arg0: i32, %arg1: i32, %arg2: i32) -> (i32, i32) {
    %c0_i32 = arith.constant 0 : i32
    %c0_i32_0 = arith.constant 0 : i32
    %c0_i32_1 = arith.constant 0 : i32
    return %c0_i32, %c0_i32_0 : i32, i32
  }
  func.func @transform_3(%arg0: i32, %arg1: i32, %arg2: i32) -> (i32, i32, i32) {
    %c0_i32 = arith.constant 0 : i32
    return %arg0, %arg2, %arg1 : i32, i32, i32
  }
  func.func @transform_4(%arg0: i32, %arg1: i32, %arg2: i32) -> (i32, i32, i32, i32) {
    %c0_i32 = arith.constant 0 : i32
    %c0_i32_0 = arith.constant 0 : i32
    return %arg0, %arg1, %arg2, %c0_i32 : i32, i32, i32, i32
  }
}

</mosaic_0001>

<bundles_post_ra>
// kernel: tpu_custom_call.1
= control target key start
LH: loop header
LB: loop body
LE: loop exit
PB: predicated region body
PF: predicated region fallthrough
CT: control target
= control target key end

     0   :  { %s1982_s0 = inlined_call_operand.hbm [shape: f32[2,8,32], index: 0, kind: input, shape index: {}]   ;;  %s1983_s1 = inlined_call_operand.hbm [shape: f32[32,96], index: 1, kind: input, shape index: {}]   ;;  %s1984_s2 = inlined_call_operand.vmem [shape: f32[1,96], index: 2, kind: input, shape index: {}]   ;;  %s1985_s3 = inlined_call_operand.hbm [shape: f32[2,8,32], index: 3, kind: output, shape index: {0}]   ;;  %s1986_s4 = inlined_call_operand.hbm [shape: f32[2,4,8,8], index: 4, kind: output, shape index: {1}]  }
   0x1   :  { %1988 = sst [smem:[#allocation17_spill]] %s1983_s1 }
   0x2   :  { %10 = vsyncpa [#allocation6], 0 }
   0x3   :  { %12 = vsyncpa [#allocation6 + $0x1], 0 }
   0x4   :  { %13 = vsyncpa [#allocation9], 0 }
   0x5   :  { %14 = vsyncpa [#allocation7], 0 }
   0x6   :  { %16 = vsyncpa [#allocation7 + $0x1], 0 }
   0x7   :  { %17 = vsyncpa [#allocation12], 0 }
   0x8   :  { %19 = vsyncpa [#allocation12 + $0x1], 0  ;;  %s1687_s15 = smov 0   ;;  %s1689_s16 = smov 0  }
   0x9   :  { %s1691_s17 = smov 0   ;;  %s1693_s18 = smov 0  }
   0xa   :  { %s1695_s19 = smov 0   ;;  %s1697_s20 = smov 0  }
   0xb LB: > { %s1263_s21 = sadd.s32 4294967295, %s1643_s20   ;;  %s1264_s22 = sadd.s32 4294967294, %s1643_s20   ;;  %s1643_s20 = sphi %s1697_s20, %s25_s20   ;;  %s1639_s19 = sphi %s1695_s19, %s2006_s19   ;;  %s1635_s18 = sphi %s1693_s18, %s2005_s18   ;;  %s1631_s17 = sphi %s1691_s17, %s2004_s17   ;;  %s1627_s16 = sphi %s1689_s16, %s2003_s16   ;;  %s1623_s15 = sphi %s1687_s15, %s2002_s15  }
   0xc   : > { %p64_p0 = scmp.ne.s32.totalorder %s1627_s16, %s1623_s15  ;;  %p1721_p1 = scmp.eq.s32.totalorder %s1263_s21, 0 }
   0xd   : > { %p1725_p2 = scmp.eq.s32.totalorder %s1263_s21, 1  ;;  %p140_p3 = scmp.eq.s32.totalorder %s1264_s22, 1 }
   0xe   : > { %p1731_p4 = por %p1721_p1, %p64_p0  ;;  %p1265_p5 = scmp.ge.s32.totalorder %s1643_s20, 1 }
   0xf   : > { %p1736_p6 = por %p140_p3, %p64_p0  ;;  %p177_p7 = scmp.lt.s32.totalorder %s1643_s20, 3 }
  0x10   : > { %s1991_s25 = scalar_select %p1731_p4, 1, 0 }
  0x11   : > { %s1992_s26 = scalar_select %p1736_p6, 1, 0 }
  0x12   : > { %p1741_p8 = pnand %p1265_p5, %p177_p7  ;;  %s1645_s28 = smov [#allocation8]  }
  0x13   : > { %s189_s29 = sshll.u32 %s1645_s28, 4  ;;  %s44_s5 = sadd.s32 1, %s1639_s19  ;;  %s190_s29 = int_to_ptr.vmem [resolvable:$true] %s189_s29 }
  0x14   : > { %p1378_p9 = pneg %p1741_p8  ;;  %s1486_s6 = scalar_lea.vmem %s190_s29, 512 }
  0x15   : > { %p1487_p13 = scmp.ne.s32.totalorder %s190_s29, %s1486_s6  ;;  %p1494_p5 = scmp.lt.s32.totalorder %s190_s29, %s190_s29 }
  0x16   : > { %p1750_p11 = pnand %p1378_p9, %p1721_p1  ;;  %p1495_p7 = scmp.lt.s32.totalorder %s1486_s6, %s1486_s6 }
  0x18   : > { %p1477_p12 = pneg %p1750_p11  ;;  %p1496_p6 = por %p1495_p7, %p1494_p5 }
  0x1a   : > { %p1489_p0 = pnand %p1487_p13, %p1477_p12 }
  0x1c   : > { %p1490_p3 = pneg %p1489_p0 }
  0x1e   : > { %p1497_p4 = pnand %p1496_p6, %p1490_p3 }
  0x20   : > { %1500 = shalt.err (!%p1497_p4)
}
  0x21   : > { %s1646_s7 = smov 128   ;;  %s1647_s8 = smov 8  }
  0x22   : > { %s1995_s1 = sld [smem:[#allocation17_spill]]  ;;  %p46_p6 = scmp.ge.s32.totalorder %s44_s5, 2 }
  0x23   : > { %s51_s11 = sadd.s32 1, %s1631_s17  ;;  %p58_p4 = scmp.ne.s32.totalorder %s1631_s17, %s1627_s16 }
  0x24   : > { %p59_p9 = scmp.eq.s32.totalorder %s1643_s20, 0  ;;  %s2008_s5 = smov (%p46_p6, %s44_s5), 0 }
  0x25   : > { %p1774_p13 = por %p1725_p2, %p58_p4  ;;  %s48_s14 = ssub.s32 %s1639_s19, %s2008_s5 }
  0x26   : > { %p1768_p12 = por %p59_p9, %p58_p4  ;;  %p1394_p0 = scmp.lt.s32.totalorder %s1643_s20, 2 }
  0x27   : > { %s206_s21 = sand.u32 1, %s1631_s17  }
  0x28   : > { %1381 = dma.hbm_to_vmem [thread:$0]  (!%p1750_p11), %s1995_s1, 512, %s190_s29, [#allocation9], %s1646_s7, %s1646_s7, %s1647_s8  }
  0x29   : > { %p49_p11 = scmp.eq.s32.totalorder %s48_s14, 0  ;;  %s1268_s22 = sshll.u32 %s206_s21, 3 }
  0x2a   : > { %s1269_s29 = sshll.u32 %s1639_s19, 7  ;;  %s210_s8 = scalar_lea.vmem [#allocation5], %s1268_s22 }
  0x2b   : > { %s1783_s28 = scalar_select %p49_p11, %s1631_s17, %s51_s11  }
  0x2c   : > { %s215_s7 = scalar_lea.hbm %s1982_s0, %s1269_s29  ;;  %s217_s9 = sshll.u32 %s210_s8, 4  ;;  %s218_s9 = int_to_ptr.vmem [resolvable:$true] %s217_s9 }
  0x2d   : > { %p1791_p2 = pnand %p1394_p0, %p1768_p12  ;;  %s207_s10 = scalar_lea.sflag [#allocation6], %s206_s21 }
  0x2e   : > { %s1514_s14 = scalar_lea.vmem %s218_s9, 128  ;;  %s1648_s11 = smov [#allocation5]  }
  0x2f   : > { %p1503_p3 = pneg %p1791_p2  ;;  %p1515_p5 = scmp.ne.s32.totalorder %s218_s9, %s1514_s14 }
  0x30   : > { %s1519_s1 = sshll.u32 %s1648_s11, 4  ;;  %s1520_s1 = int_to_ptr.vmem [resolvable:$false] %s1519_s1 }
  0x31   : > { %p1517_p7 = pnand %p1515_p5, %p1503_p3  ;;  %s1521_s29 = scalar_lea.vmem %s1520_s1, 256 }
  0x32   : > { %p1522_p4 = scmp.lt.s32.totalorder %s218_s9, %s1520_s1  ;;  %p1523_p9 = scmp.lt.s32.totalorder %s1521_s29, %s1514_s14 }
  0x33   : > { %p1518_p6 = pneg %p1517_p7 }
  0x34   : > { %p1524_p11 = por %p1523_p9, %p1522_p4 }
  0x36   : > { %p1525_p10 = pnand %p1524_p11, %p1518_p6 }
  0x38   : > { %1528 = shalt.err (!%p1525_p10)
}
  0x39   : > { %1385 = dma.hbm_to_vmem [thread:$0]  (!%p1791_p2), %s215_s7, 128, %s218_s9, %s207_s10  }
  0x3a   : > { %226 = sbr.rel (%p1741_p8) target bundleno = 1874 (0x752), region = 32  ;;  %s1802_s12 = sand.u32 (!%p1741_p8), 1, %s1627_s16  }
  0x3b   : > { %s1271_s21 = sshll.u32 (!%p1741_p8), %s1802_s12, 3  ;;  %s229_s22 = scalar_lea.sflag (!%p1741_p8), [#allocation6], %s1802_s12 }
  0x3c   : > { %s232_s1 = scalar_lea.vmem (!%p1741_p8), [#allocation5], %s1271_s21  ;;  %p1999_p12 = scmp.ne.s32.totalorder (!%p1741_p8), %s1991_s25, 0 }
  0x3f   : > { %1606 = dma.done.wait (%p1999_p12), %s229_s22, 128  }
  0x40   : > { %1608 = vsyncadd (%p1999_p12), %s229_s22, 4294967168 }
  0x41   : > { %1610 = dma.done.wait (%p1721_p1), [#allocation9], 512  }
  0x42   : > { %1612 = vsyncadd (%p1721_p1), [#allocation9], 4294966784  ;;  %v1649_v0 = vmov 0.0   ;;  %vm1650_vm0 = vmmov 0   ;;  %v277_v1 = vld [vmem:[#allocation8 + $0x18] sm:$0xff]  ;;  %v276_v2 = vld [vmem:[#allocation8 + $0x10] sm:$0xff] }
  0x43   : > { %1317 = vmatprep.subr.mxu0 %v1649_v0  ;;  %1325 = vmatprep.mubr.msk.f32.mxu0 %vm1650_vm0, %v1649_v0  ;;  %v275_v3 = vld [vmem:[#allocation8 + $0x8] sm:$0xff]  ;;  %v274_v4 = vld [vmem:[#allocation8] sm:$0xff]  ;;  %v273_v5 = vld [vmem:[%s232_s1] sm:$0xff]  ;;  %vm285_vm1 = vcmask 261120   ;;  %s1651_s27 = smov 96   ;;  %vm396_vm2 = vcmask 64512  }
  0x44   : > { %1328 = vmatprep.subr.mxu1 %v1649_v0  ;;  %1330 = vmatprep.mubr.msk.f32.mxu1 %vm1650_vm0, %v1649_v0  ;;  %v1275_v6 = vld [vmem:[%s1984_s2] ss:$0 sm:$0xff]  ;;  %s1652_s30 = smov 64   ;;  %s1653_s6 = smov 120  }
  0x45   : > { %1318 = vmatpush3.msra.mxu0 %v277_v1  ;;  %s1654_s7 = smov 112   ;;  %s1655_s8 = smov 104  }
  0x46   : > { %1319 = vmatprep.subr.mxu0 %v1649_v0  ;;  %s1274_s9 = sshll.u32 %s1802_s12, 5  ;;  %s1295_s10 = sshll.u32 %s1635_s18, 9 }
  0x47   : > { %1320 = vmatpush3.msra.mxu0 %v276_v2  ;;  %s1852_s24 = scalar_lea.vmem [#allocation11], %s1274_s9  ;;  %s1656_s11 = smov 8  }
  0x48   : > { %1321 = vmatprep.subr.mxu0 %v1649_v0  ;;  %s1123_s14 = sshll.u32 %s1852_s24, 4  ;;  %s1903_s1 = scalar_lea.hbm %s1986_s4, %s1295_s10  ;;  %s1905_s14 = int_to_ptr.vmem [resolvable:$true] %s1123_s14 }
  0x49   : > { %1322 = vmatpush3.msra.mxu0 %v275_v3  ;;  %s1092_s23 = scalar_lea.sflag [#allocation12], %s1802_s12  ;;  %s1529_s25 = scalar_lea.vmem %s1905_s14, 512 }
  0x4a   : > { %1323 = vmatprep.subr.mxu0 %v1649_v0  ;;  %p1530_p1 = scmp.ne.s32.totalorder %s1905_s14, %s1529_s25 }
  0x4b   : > { %1324 = vmatpush3.msra.mxu0 %v274_v4 }
  0x4c   : > { %1326 = vmatmul.mubr.msk.f32.vlgmr.msra.gmra.mxu0 %vm285_vm1, %v273_v5  ;;  %1343 = vmatprep.subr.mxu0 %v1649_v0  ;;  %p1531_p8 = pnand %p1530_p1, %p1774_p13 }
  0x4d   : > { %1345 = vmatprep.mubr.msk.f32.mxu0 %vm1650_vm0, %v1649_v0 }
  0x4e   : > { %p1532_p10 = pneg %p1531_p8 }
 0x10c   : > { %v355_v7 = vpop.f32.mrf.mxu0 }
 0x10d   : > { %v356_v8 = vadd.f32 %v1275_v6, %v355_v7 }
 0x10e   : > { %v1327_v9 = vpop.f32.mrf.mxu0 }
 0x10f   : > { %359 = vst.msk [vmem:[#allocation2] sm:$0xff] %vm285_vm1, %v356_v8  ;;  %361 = vrot.lane.b32.xlu0 %v356_v8, %s1651_s27  ;;  %s1657_s27 = smov [#allocation11]  }
 0x116   : > { %v409_v13 = vld [vmem:[#allocation2] sm:$0xff] }
 0x181   : > { %v362_v10 = vpop.permute.xlu0 %361 }
 0x182   : > { %364 = vxpose.xlu0.b32.start.end [1/1] (short) (narrow) %v362_v10, 32 }
 0x1fe   : > { %v380_v11 = vpop.trf.xlu0 }
 0x1ff   : > { %397 = vst.msk [vmem:[#allocation3] sm:$0xff] %vm396_vm2, %v380_v11 }
 0x202   : > { %v381_v24 = vpop.trf.xlu0 }
 0x203   : > { %398 = vst.msk [vmem:[#allocation3 + $0x8] sm:$0xff] %vm396_vm2, %v381_v24 }
 0x206   : > { %v412_v12 = vld [vmem:[#allocation3] sm:$0xff]  ;;  %v382_v25 = vpop.trf.xlu0 }
 0x207   : > { %1329 = vmatpush3.msra.mxu1 %v412_v12  ;;  %399 = vst.msk [vmem:[#allocation3 + $0x10] sm:$0xff] %vm396_vm2, %v382_v25 }
 0x208   : > { %1331 = vmatmul.mubr.msk.f32.vlgmr.msra.gmra.mxu1 %vm396_vm2, %v409_v13  ;;  %1333 = vmatprep.subr.mxu1 %v1649_v0 }
 0x209   : > { %1335 = vmatprep.mubr.msk.f32.mxu1 %vm1650_vm0, %v1649_v0 }
 0x20a   : > { %v383_v26 = vpop.trf.xlu0  ;;  %v413_v31 = vld [vmem:[#allocation3 + $0x8] sm:$0xff] }
 0x20b   : > { %400 = vst.msk [vmem:[#allocation3 + $0x18] sm:$0xff] %vm396_vm2, %v383_v26 }
 0x20e   : > { %v414_v32 = vld [vmem:[#allocation3 + $0x10] sm:$0xff] }
 0x212   : > { %v415_v34 = vld [vmem:[#allocation3 + $0x18] sm:$0xff] }
 0x2c8   : > { %v488_v14 = vpop.f32.mrf.mxu1 }
 0x2c9   : > { %v492_v15 = vsel %vm396_vm2, %v488_v14, -inf }
 0x2ca   : > { %493 = vmax.xlane.f32.xlu1 %v492_v15  ;;  %v1332_v16 = vpop.f32.mrf.mxu1 }
 0x2db   : > { %401 = vrot.lane.b32.xlu1 %v356_v8, %s1652_s30  ;;  %s1533_s30 = sshll.u32 %s1657_s27, 4  ;;  %s1534_s30 = int_to_ptr.vmem [resolvable:$false] %s1533_s30 }
 0x2dc   : > { %p1536_p0 = scmp.lt.s32.totalorder %s1905_s14, %s1534_s30 }
 0x2df   : > { %577 = vrot.lane.b32.xlu1 %v409_v13, %s1653_s6 }
 0x353   : > { %v494_v17 = vpop.xlane.xlu1 %493 }
 0x354   : > { %v495_v18 = vsub.f32 %v488_v14, %v494_v17 }
 0x356   : > { %v496_v19 = vmul.f32 1.442695, %v495_v18 }
 0x357   : > { %v402_v20 = vpop.permute.xlu1 %401 }
 0x358   : > { %1459 = vpow2.f32 %v496_v19  ;;  %404 = vst.msk [vmem:[#allocation4] sm:$0xff] %vm285_vm1, %v402_v20 }
 0x35b   : > { %v578_v27 = vpop.permute.xlu1 %577 }
 0x35f   : > { %v1841_v21 = vld [vmem:[#allocation4] sm:$0xff] }
 0x360   : > { %1334 = vmatpush3.msra.mxu1 %v1841_v21 }
 0x361   : > { %1338 = vmatprep.subr.mxu1 %v1649_v0 }
 0x365   : > { %v1460_v22 = vpop.eup %1459 }
 0x366   : > { %v498_v23 = vsel %vm396_vm2, %v1460_v22, 0.0 }
 0x367   : > { %499 = vadd.xlane.f32.xlu1 %v498_v23 }
 0x378   : > { %741 = vrot.lane.b32.xlu1 %v409_v13, %s1654_s7 }
 0x37c   : > { %904 = vrot.lane.b32.xlu1 %v409_v13, %s1655_s8 }
 0x3f0   : > { %v500_v28 = vpop.xlane.xlu1 %499 }
 0x3f1   : > { %1461 = vrcp.f32 %v500_v28 }
 0x3f4   : > { %v742_v33 = vpop.permute.xlu1 %741 }
 0x3f8   : > { %v905_v35 = vpop.permute.xlu1 %904 }
 0x3fe   : > { %v1462_v29 = vpop.eup %1461 }
 0x3ff   : > { %v502_v30 = vmul.f32 %v1462_v29, %v1460_v22 }
 0x401   : > { %503 = vst.msk [vmem:[%s1852_s24] sm:$0xff] %vm396_vm2, %v502_v30  ;;  %1336 = vmatmul.mubr.msk.f32.vlgmr.msra.gmra.mxu1 %vm396_vm2, %v502_v30 }
 0x402   : > { %1339 = vmatpush3.msra.mxu1 %v413_v31  ;;  %1340 = vmatprep.mubr.msk.f32.mxu1 %vm1650_vm0, %v1649_v0 }
 0x403   : > { %1348 = vmatprep.subr.mxu1 %v1649_v0 }
 0x405   : > { %1341 = vmatmul.mubr.msk.f32.vlgmr.msra.gmra.mxu1 %vm396_vm2, %v578_v27 }
 0x406   : > { %1349 = vmatpush3.msra.mxu1 %v414_v32  ;;  %1350 = vmatprep.mubr.msk.f32.mxu1 %vm1650_vm0, %v1649_v0 }
 0x407   : > { %1358 = vmatprep.subr.mxu1 %v1649_v0 }
 0x409   : > { %1351 = vmatmul.mubr.msk.f32.vlgmr.msra.gmra.mxu1 %vm396_vm2, %v742_v33 }
 0x40a   : > { %1359 = vmatpush3.msra.mxu1 %v415_v34  ;;  %1360 = vmatprep.mubr.msk.f32.mxu1 %vm1650_vm0, %v1649_v0 }
 0x40d   : > { %1361 = vmatmul.mubr.msk.f32.vlgmr.msra.gmra.mxu1 %vm396_vm2, %v905_v35 }
 0x4c1   : > { %v1868_v36 = vpop.f32.mrf.mxu1 }
 0x4c3   : > { %v1337_v37 = vpop.f32.mrf.mxu1 }
 0x4c5   : > { %v647_v38 = vpop.f32.mrf.mxu1 }
 0x4c6   : > { %v651_v39 = vsel %vm396_vm2, %v647_v38, -inf }
 0x4c7   : > { %652 = vmax.xlane.f32.xlu0 %v651_v39  ;;  %v1342_v40 = vpop.f32.mrf.mxu1 }
 0x4c9   : > { %v811_v41 = vpop.f32.mrf.mxu1 }
 0x4ca   : > { %v815_v42 = vsel %vm396_vm2, %v811_v41, -inf }
 0x4cb   : > { %816 = vmax.xlane.f32.xlu1 %v815_v42  ;;  %v1352_v43 = vpop.f32.mrf.mxu1 }
 0x4cd   : > { %v974_v44 = vpop.f32.mrf.mxu1 }
 0x4ce   : > { %v978_v45 = vsel %vm396_vm2, %v974_v44, -inf }
 0x4cf   : > { %979 = vmax.xlane.f32.xlu1 %v978_v45  ;;  %v1362_v46 = vpop.f32.mrf.mxu1 }
 0x4dd   : > { %828 = vrot.lane.b32.xlu0 %v1841_v21, %s1654_s7 }
 0x4e0   : > { %665 = vrot.lane.b32.xlu1 %v1841_v21, %s1653_s6  ;;  %s1535_s6 = scalar_lea.vmem %s1534_s30, 1024 }
 0x4e1   : > { %p1537_p2 = scmp.lt.s32.totalorder %s1535_s6, %s1529_s25 }
 0x4e3   : > { %p1538_p3 = por %p1537_p2, %p1536_p0 }
 0x4e5   : > { %p1539_p5 = pnand %p1538_p3, %p1532_p10 }
 0x550   : > { %v653_v47 = vpop.xlane.xlu0 %652 }
 0x551   : > { %v654_v48 = vsub.f32 %v647_v38, %v653_v47 }
 0x553   : > { %v655_v49 = vmul.f32 1.442695, %v654_v48 }
 0x554   : > { %v817_v50 = vpop.xlane.xlu1 %816  ;;  %v829_v5 = vpop.permute.xlu0 %828 }
 0x555   : > { %1463 = vpow2.f32 %v655_v49  ;;  %v818_v51 = vsub.f32 %v811_v41, %v817_v50 }
 0x557   : > { %v819_v52 = vmul.f32 1.442695, %v818_v51 }
 0x558   : > { %v980_v53 = vpop.xlane.xlu1 %979 }
 0x559   : > { %1465 = vpow2.f32 %v819_v52  ;;  %v981_v54 = vsub.f32 %v974_v44, %v980_v53 }
 0x55b   : > { %v982_v55 = vmul.f32 1.442695, %v981_v54 }
 0x55c   : > { %v666_v56 = vpop.permute.xlu1 %665 }
 0x55d   : > { %1467 = vpow2.f32 %v982_v55  ;;  %1344 = vmatpush3.msra.mxu0 %v666_v56 }
 0x55e   : > { %1353 = vmatprep.subr.mxu0 %v1649_v0 }
 0x562   : > { %v1464_v57 = vpop.eup %1463 }
 0x563   : > { %v657_v58 = vsel %vm396_vm2, %v1464_v57, 0.0 }
 0x564   : > { %658 = vadd.xlane.f32.xlu1 %v657_v58 }
 0x566   : > { %v1466_v59 = vpop.eup %1465 }
 0x567   : > { %v821_v60 = vsel %vm396_vm2, %v1466_v59, 0.0 }
 0x568   : > { %822 = vadd.xlane.f32.xlu1 %v821_v60 }
 0x56a   : > { %v1468_v61 = vpop.eup %1467 }
 0x56b   : > { %v984_v62 = vsel %vm396_vm2, %v1468_v61, 0.0 }
 0x56c   : > { %985 = vadd.xlane.f32.xlu1 %v984_v62 }
 0x57d   : > { %991 = vrot.lane.b32.xlu1 %v1841_v21, %s1655_s8 }
 0x5ed   : > { %v659_v63 = vpop.xlane.xlu1 %658 }
 0x5ee   : > { %1469 = vrcp.f32 %v659_v63 }
 0x5f1   : > { %v823_v1 = vpop.xlane.xlu1 %822 }
 0x5f2   : > { %1471 = vrcp.f32 %v823_v1 }
 0x5f5   : > { %v986_v2 = vpop.xlane.xlu1 %985 }
 0x5f6   : > { %1473 = vrcp.f32 %v986_v2 }
 0x5f9   : > { %v992_v8 = vpop.permute.xlu1 %991 }
 0x5fb   : > { %v1470_v3 = vpop.eup %1469 }
 0x5fc   : > { %v661_v4 = vmul.f32 %v1470_v3, %v1464_v57 }
 0x5fe   : > { %1280 = vst.msk [vmem:[%s1852_s24 + $0x8] sm:$0xff] %vm396_vm2, %v661_v4  ;;  %1346 = vmatmul.mubr.msk.f32.vlgmr.msra.gmra.mxu0 %vm396_vm2, %v661_v4 }
 0x5ff   : > { %v1472_v6 = vpop.eup %1471  ;;  %1354 = vmatpush3.msra.mxu0 %v829_v5  ;;  %1355 = vmatprep.mubr.msk.f32.mxu0 %vm1650_vm0, %v1649_v0 }
 0x600   : > { %1363 = vmatprep.subr.mxu0 %v1649_v0  ;;  %v825_v7 = vmul.f32 %v1472_v6, %v1466_v59 }
 0x602   : > { %1283 = vst.msk [vmem:[%s1852_s24 + $0x10] sm:$0xff] %vm396_vm2, %v825_v7  ;;  %1356 = vmatmul.mubr.msk.f32.vlgmr.msra.gmra.mxu0 %vm396_vm2, %v825_v7 }
 0x603   : > { %v1474_v9 = vpop.eup %1473  ;;  %1364 = vmatpush3.msra.mxu0 %v992_v8  ;;  %1365 = vmatprep.mubr.msk.f32.mxu0 %vm1650_vm0, %v1649_v0 }
 0x604   : > { %v988_v10 = vmul.f32 %v1474_v9, %v1468_v61 }
 0x606   : > { %1286 = vst.msk [vmem:[%s1852_s24 + $0x18] sm:$0xff] %vm396_vm2, %v988_v10  ;;  %1366 = vmatmul.mubr.msk.f32.vlgmr.msra.gmra.mxu0 %vm396_vm2, %v988_v10 }
 0x6be   : > { %v737_v11 = vpop.f32.mrf.mxu0 }
 0x6bf   : > { %1068 = vrot.lane.b32.xlu1 %v737_v11, %s1656_s11 }
 0x6c0   : > { %v1347_v0 = vpop.f32.mrf.mxu0 }
 0x6c1   : > { %1542 = shalt.err (!%p1539_p5)
}
 0x6c2   : > { %s1543_s7 = scalar_lea.hbm %s1903_s1, 512  ;;  %s1547_s24 = scalar_lea.hbm %s1986_s4, 1024 }
 0x6c3   : > { %p1544_p7 = scmp.ne.s32.totalorder %s1903_s1, %s1543_s7  ;;  %p1548_p9 = scmp.lt.s32.totalorder %s1903_s1, %s1986_s4 }
 0x6c4   : > { %p1549_p11 = scmp.lt.s32.totalorder %s1547_s24, %s1543_s7 }
 0x6c5   : > { %p1545_p6 = pnand %p1544_p7, %p1774_p13 }
 0x6c6   : > { %p1550_p12 = por %p1549_p11, %p1548_p9 }
 0x6c7   : > { %p1546_p4 = pneg %p1545_p6 }
 0x6c9   : > { %p1551_p1 = pnand %p1550_p12, %p1546_p4 }
 0x6cb   : > { %1554 = shalt.err (!%p1551_p1)
}
 0x6cc   : > { %s1658_s22 = smov 128   ;;  %v900_v12 = vpop.f32.mrf.mxu0  ;;  %s1659_s25 = smov 16   ;;  %vm1080_vm3 = vcmask 130048   ;;  %vm1082_vm4 = vcmask 195584  }
 0x6cd   : > { %1375 = dma.vmem_to_hbm [thread:$0]  (%p1774_p13), %s1905_s14, 512, %s1903_s1, %s1092_s23, %s1658_s22, %s1658_s22, %s1656_s11  }
 0x6ce   : > { %1072 = vrot.lane.b32.xlu0 %v900_v12, %s1659_s25  ;;  %v1357_v13 = vpop.f32.mrf.mxu0  ;;  %s1660_s27 = smov 24   ;;  %s1290_s30 = sshll.u32 %s1635_s18, 7 }
 0x6cf   : > { %s258_s6 = scalar_lea.vmem [#allocation10], %s1271_s21  ;;  %s1939_s1 = scalar_lea.hbm %s1985_s3, %s1290_s30 }
 0x6d0   : > { %v1063_v14 = vpop.f32.mrf.mxu0  ;;  %s1107_s7 = sshll.u32 %s258_s6, 4  ;;  %s1087_s23 = scalar_lea.sflag [#allocation7], %s1802_s12  ;;  %s1108_s7 = int_to_ptr.vmem [resolvable:$true] %s1107_s7 }
 0x6d1   : > { %1076 = vrot.lane.b32.xlu1 %v1063_v14, %s1660_s27  ;;  %s1555_s18 = scalar_lea.vmem %s1108_s7, 128  ;;  %s1661_s21 = smov [#allocation10]  }
 0x6d2   : > { %v1367_v15 = vpop.f32.mrf.mxu0  ;;  %p1556_p8 = scmp.ne.s32.totalorder %s1108_s7, %s1555_s18  ;;  %s1559_s8 = sshll.u32 %s1661_s21, 4  ;;  %s1560_s8 = int_to_ptr.vmem [resolvable:$false] %s1559_s8 }
 0x6d3   : > { %s1561_s9 = scalar_lea.vmem %s1560_s8, 256  ;;  %p1562_p2 = scmp.lt.s32.totalorder %s1108_s7, %s1560_s8 }
 0x6d4   : > { %p1557_p10 = pnand %p1556_p8, %p1774_p13  ;;  %p1563_p3 = scmp.lt.s32.totalorder %s1561_s9, %s1555_s18 }
 0x6d6   : > { %p1558_p0 = pneg %p1557_p10  ;;  %p1564_p5 = por %p1563_p3, %p1562_p2 }
 0x6d8   : > { %p1565_p7 = pnand %p1564_p5, %p1558_p0 }
 0x731   : > { %v1069_v16 = vpop.permute.xlu1 %1068 }
 0x732   : > { %v1079_v18 = vsel %vm396_vm2, %v1868_v36, %v1069_v16 }
 0x740   : > { %v1073_v17 = vpop.permute.xlu0 %1072 }
 0x741   : > { %v1081_v19 = vsel %vm1080_vm3, %v1079_v18, %v1073_v17 }
 0x743   : > { %v1077_v20 = vpop.permute.xlu1 %1076 }
 0x744   : > { %v1083_v21 = vsel %vm1082_vm4, %v1081_v19, %v1077_v20 }
 0x745   : > { %1085 = vst.msk [vmem:[%s258_s6] sm:$0xff] %vm285_vm1, %v1083_v21 }
 0x746   : > { %1568 = shalt.err (!%p1565_p7)
}
 0x747   : > { %s1569_s24 = scalar_lea.hbm %s1939_s1, 128  ;;  %s1573_s29 = scalar_lea.hbm %s1985_s3, 256 }
 0x748   : > { %p1570_p6 = scmp.ne.s32.totalorder %s1939_s1, %s1569_s24  ;;  %p1574_p11 = scmp.lt.s32.totalorder %s1939_s1, %s1985_s3 }
 0x749   : > { %p1575_p12 = scmp.lt.s32.totalorder %s1573_s29, %s1569_s24 }
 0x74a   : > { %p1571_p4 = pnand %p1570_p6, %p1774_p13 }
 0x74b   : > { %p1576_p1 = por %p1575_p12, %p1574_p11 }
 0x74c   : > { %p1572_p9 = pneg %p1571_p4 }
 0x74e   : > { %p1577_p8 = pnand %p1576_p1, %p1572_p9 }
 0x750   : > { %1580 = shalt.err (!%p1577_p8)
}
 0x751   : > { %1374 = dma.vmem_to_hbm [thread:$0]  (%p1774_p13), %s1108_s7, 128, %s1939_s1, %s1087_s23  }
 0x752 PF: > { %s1138_s27 = sand.u32 1, %s1623_s15   ;;  %p2000_p10 = scmp.ne.s32.totalorder %s1992_s26, 0 }
 0x753   : > { %p2001_p0 = scmp.ge.s32.totalorder %s1643_s20, 2  ;;  %s1139_s30 = scalar_lea.sflag [#allocation7], %s1138_s27 }
 0x755   : > { %p1387_p2 = pnand %p2001_p0, %p2000_p10 }
 0x757   : > { %p1388_p3 = pneg %p1387_p2 }
 0x759   : > { %1614 = dma.done.wait (%p1388_p3), %s1139_s30, 128  }
 0x75a   : > { %1616 = vsyncadd (%p1388_p3), %s1139_s30, 4294967168  ;;  %s1148_s6 = scalar_lea.sflag [#allocation12], %s1138_s27 }
 0x75b   : > { %1618 = dma.done.wait (%p1388_p3), %s1148_s6, 512  }
 0x75c   : > { %1620 = vsyncadd (%p1388_p3), %s1148_s6, 4294966784  ;;  %s25_s20 = sadd.s32 1, %s1643_s20   ;;  %s2002_s15 = smov %s1627_s16 }
 0x75d   : > { %p22_p5 = scmp.ge.s32.totalorder %s25_s20, 4   ;;  %s2003_s16 = smov %s1631_s17 }
 0x75e   : > { %s2004_s17 = smov %s1783_s28  ;;  %s2005_s18 = smov %s1639_s19 }
 0x75f   : > { %s2006_s19 = smov %s2008_s5  ;;  %24 = sbr.rel (!%p22_p5) target bundleno = 11 (0xb), region = 108 }
 0x764   :  { %1153 = vsyncpa [#allocation6], 1 }
 0x765   :  { %1155 = vsyncpa [#allocation6 + $0x1], 1 }
 0x766   :  { %1156 = vsyncpa [#allocation9], 1 }
 0x767   :  { %1157 = vsyncpa [#allocation7], 1 }
 0x768   :  { %1159 = vsyncpa [#allocation7 + $0x1], 1 }
 0x769   :  { %1160 = vsyncpa [#allocation12], 1 }
 0x76a   :  { %1162 = vsyncpa [#allocation12 + $0x1], 1 }

// kernel: tpu_custom_call.1
= control target key start
LH: loop header
LB: loop body
LE: loop exit
PB: predicated region body
PF: predicated region fallthrough
CT: control target
= control target key end

     0   :  { %s1982_s0 = inlined_call_operand.hbm [shape: f32[2,8,32], index: 0, kind: input, shape index: {}]   ;;  %s1983_s1 = inlined_call_operand.hbm [shape: f32[32,96], index: 1, kind: input, shape index: {}]   ;;  %s1984_s2 = inlined_call_operand.vmem [shape: f32[1,96], index: 2, kind: input, shape index: {}]   ;;  %s1985_s3 = inlined_call_operand.hbm [shape: f32[2,8,32], index: 3, kind: output, shape index: {0}]   ;;  %s1986_s4 = inlined_call_operand.hbm [shape: f32[2,4,8,8], index: 4, kind: output, shape index: {1}]  }
   0x1   :  { %1988 = sst [smem:[#allocation17_spill]] %s1983_s1 }
   0x2   :  { %10 = vsyncpa [#allocation6], 0 }
   0x3   :  { %12 = vsyncpa [#allocation6 + $0x1], 0 }
   0x4   :  { %13 = vsyncpa [#allocation9], 0 }
   0x5   :  { %14 = vsyncpa [#allocation7], 0 }
   0x6   :  { %16 = vsyncpa [#allocation7 + $0x1], 0 }
   0x7   :  { %17 = vsyncpa [#allocation12], 0 }
   0x8   :  { %19 = vsyncpa [#allocation12 + $0x1], 0  ;;  %s1687_s15 = smov 0   ;;  %s1689_s16 = smov 0  }
   0x9   :  { %s1691_s17 = smov 0   ;;  %s1693_s18 = smov 0  }
   0xa   :  { %s1695_s19 = smov 0   ;;  %s1697_s20 = smov 0  }
   0xb LB: > { %s1263_s21 = sadd.s32 4294967295, %s1643_s20   ;;  %s1264_s22 = sadd.s32 4294967294, %s1643_s20   ;;  %s1643_s20 = sphi %s1697_s20, %s25_s20   ;;  %s1639_s19 = sphi %s1695_s19, %s2006_s19   ;;  %s1635_s18 = sphi %s1693_s18, %s2005_s18   ;;  %s1631_s17 = sphi %s1691_s17, %s2004_s17   ;;  %s1627_s16 = sphi %s1689_s16, %s2003_s16   ;;  %s1623_s15 = sphi %s1687_s15, %s2002_s15  }
   0xc   : > { %p64_p0 = scmp.ne.s32.totalorder %s1627_s16, %s1623_s15  ;;  %p1721_p1 = scmp.eq.s32.totalorder %s1263_s21, 0 }
   0xd   : > { %p1725_p2 = scmp.eq.s32.totalorder %s1263_s21, 1  ;;  %p140_p3 = scmp.eq.s32.totalorder %s1264_s22, 1 }
   0xe   : > { %p1731_p4 = por %p1721_p1, %p64_p0  ;;  %p1265_p5 = scmp.ge.s32.totalorder %s1643_s20, 1 }
   0xf   : > { %p1736_p6 = por %p140_p3, %p64_p0  ;;  %p177_p7 = scmp.lt.s32.totalorder %s1643_s20, 3 }
  0x10   : > { %s1991_s25 = scalar_select %p1731_p4, 1, 0 }
  0x11   : > { %s1992_s26 = scalar_select %p1736_p6, 1, 0 }
  0x12   : > { %p1741_p8 = pnand %p1265_p5, %p177_p7  ;;  %s1645_s28 = smov [#allocation8]  }
  0x13   : > { %s189_s29 = sshll.u32 %s1645_s28, 4  ;;  %s44_s5 = sadd.s32 1, %s1639_s19  ;;  %s190_s29 = int_to_ptr.vmem [resolvable:$true] %s189_s29 }
  0x14   : > { %p1378_p9 = pneg %p1741_p8  ;;  %s1486_s6 = scalar_lea.vmem %s190_s29, 512 }
  0x15   : > { %p1487_p13 = scmp.ne.s32.totalorder %s190_s29, %s1486_s6  ;;  %p1494_p5 = scmp.lt.s32.totalorder %s190_s29, %s190_s29 }
  0x16   : > { %p1750_p11 = pnand %p1378_p9, %p1721_p1  ;;  %p1495_p7 = scmp.lt.s32.totalorder %s1486_s6, %s1486_s6 }
  0x18   : > { %p1477_p12 = pneg %p1750_p11  ;;  %p1496_p6 = por %p1495_p7, %p1494_p5 }
  0x1a   : > { %p1489_p0 = pnand %p1487_p13, %p1477_p12 }
  0x1c   : > { %p1490_p3 = pneg %p1489_p0 }
  0x1e   : > { %p1497_p4 = pnand %p1496_p6, %p1490_p3 }
  0x20   : > { %1500 = shalt.err (!%p1497_p4)
}
  0x21   : > { %s1646_s7 = smov 128   ;;  %s1647_s8 = smov 8  }
  0x22   : > { %s1995_s1 = sld [smem:[#allocation17_spill]]  ;;  %p46_p6 = scmp.ge.s32.totalorder %s44_s5, 2 }
  0x23   : > { %s51_s11 = sadd.s32 1, %s1631_s17  ;;  %p58_p4 = scmp.ne.s32.totalorder %s1631_s17, %s1627_s16 }
  0x24   : > { %p59_p9 = scmp.eq.s32.totalorder %s1643_s20, 0  ;;  %s2008_s5 = smov (%p46_p6, %s44_s5), 0 }
  0x25   : > { %p1774_p13 = por %p1725_p2, %p58_p4  ;;  %s48_s14 = ssub.s32 %s1639_s19, %s2008_s5 }
  0x26   : > { %p1768_p12 = por %p59_p9, %p58_p4  ;;  %p1394_p0 = scmp.lt.s32.totalorder %s1643_s20, 2 }
  0x27   : > { %s206_s21 = sand.u32 1, %s1631_s17  }
  0x28   : > { %1381 = dma.hbm_to_vmem [thread:$0]  (!%p1750_p11), %s1995_s1, 512, %s190_s29, [#allocation9], %s1646_s7, %s1646_s7, %s1647_s8  }
  0x29   : > { %p49_p11 = scmp.eq.s32.totalorder %s48_s14, 0  ;;  %s1268_s22 = sshll.u32 %s206_s21, 3 }
  0x2a   : > { %s1269_s29 = sshll.u32 %s1639_s19, 7  ;;  %s210_s8 = scalar_lea.vmem [#allocation5], %s1268_s22 }
  0x2b   : > { %s1783_s28 = scalar_select %p49_p11, %s1631_s17, %s51_s11  }
  0x2c   : > { %s215_s7 = scalar_lea.hbm %s1982_s0, %s1269_s29  ;;  %s217_s9 = sshll.u32 %s210_s8, 4  ;;  %s218_s9 = int_to_ptr.vmem [resolvable:$true] %s217_s9 }
  0x2d   : > { %p1791_p2 = pnand %p1394_p0, %p1768_p12  ;;  %s207_s10 = scalar_lea.sflag [#allocation6], %s206_s21 }
  0x2e   : > { %s1514_s14 = scalar_lea.vmem %s218_s9, 128  ;;  %s1648_s11 = smov [#allocation5]  }
  0x2f   : > { %p1503_p3 = pneg %p1791_p2  ;;  %p1515_p5 = scmp.ne.s32.totalorder %s218_s9, %s1514_s14 }
  0x30   : > { %s1519_s1 = sshll.u32 %s1648_s11, 4  ;;  %s1520_s1 = int_to_ptr.vmem [resolvable:$false] %s1519_s1 }
  0x31   : > { %p1517_p7 = pnand %p1515_p5, %p1503_p3  ;;  %s1521_s29 = scalar_lea.vmem %s1520_s1, 256 }
  0x32   : > { %p1522_p4 = scmp.lt.s32.totalorder %s218_s9, %s1520_s1  ;;  %p1523_p9 = scmp.lt.s32.totalorder %s1521_s29, %s1514_s14 }
  0x33   : > { %p1518_p6 = pneg %p1517_p7 }
  0x34   : > { %p1524_p11 = por %p1523_p9, %p1522_p4 }
  0x36   : > { %p1525_p10 = pnand %p1524_p11, %p1518_p6 }
  0x38   : > { %1528 = shalt.err (!%p1525_p10)
}
  0x39   : > { %1385 = dma.hbm_to_vmem [thread:$0]  (!%p1791_p2), %s215_s7, 128, %s218_s9, %s207_s10  }
  0x3a   : > { %226 = sbr.rel (%p1741_p8) target bundleno = 1874 (0x752), region = 32  ;;  %s1802_s12 = sand.u32 (!%p1741_p8), 1, %s1627_s16  }
  0x3b   : > { %s1271_s21 = sshll.u32 (!%p1741_p8), %s1802_s12, 3  ;;  %s229_s22 = scalar_lea.sflag (!%p1741_p8), [#allocation6], %s1802_s12 }
  0x3c   : > { %s232_s1 = scalar_lea.vmem (!%p1741_p8), [#allocation5], %s1271_s21  ;;  %p1999_p12 = scmp.ne.s32.totalorder (!%p1741_p8), %s1991_s25, 0 }
  0x3f   : > { %1606 = dma.done.wait (%p1999_p12), %s229_s22, 128  }
  0x40   : > { %1608 = vsyncadd (%p1999_p12), %s229_s22, 4294967168 }
  0x41   : > { %1610 = dma.done.wait (%p1721_p1), [#allocation9], 512  }
  0x42   : > { %1612 = vsyncadd (%p1721_p1), [#allocation9], 4294966784  ;;  %v1649_v0 = vmov 0.0   ;;  %vm1650_vm0 = vmmov 0   ;;  %v277_v1 = vld [vmem:[#allocation8 + $0x18] sm:$0xff]  ;;  %v276_v2 = vld [vmem:[#allocation8 + $0x10] sm:$0xff] }
  0x43   : > { %1317 = vmatprep.subr.mxu0 %v1649_v0  ;;  %1325 = vmatprep.mubr.msk.f32.mxu0 %vm1650_vm0, %v1649_v0  ;;  %v275_v3 = vld [vmem:[#allocation8 + $0x8] sm:$0xff]  ;;  %v274_v4 = vld [vmem:[#allocation8] sm:$0xff]  ;;  %v273_v5 = vld [vmem:[%s232_s1] sm:$0xff]  ;;  %vm285_vm1 = vcmask 261120   ;;  %s1651_s27 = smov 96   ;;  %vm396_vm2 = vcmask 64512  }
  0x44   : > { %1328 = vmatprep.subr.mxu1 %v1649_v0  ;;  %1330 = vmatprep.mubr.msk.f32.mxu1 %vm1650_vm0, %v1649_v0  ;;  %v1275_v6 = vld [vmem:[%s1984_s2] ss:$0 sm:$0xff]  ;;  %s1652_s30 = smov 64   ;;  %s1653_s6 = smov 120  }
  0x45   : > { %1318 = vmatpush3.msra.mxu0 %v277_v1  ;;  %s1654_s7 = smov 112   ;;  %s1655_s8 = smov 104  }
  0x46   : > { %1319 = vmatprep.subr.mxu0 %v1649_v0  ;;  %s1274_s9 = sshll.u32 %s1802_s12, 5  ;;  %s1295_s10 = sshll.u32 %s1635_s18, 9 }
  0x47   : > { %1320 = vmatpush3.msra.mxu0 %v276_v2  ;;  %s1852_s24 = scalar_lea.vmem [#allocation11], %s1274_s9  ;;  %s1656_s11 = smov 8  }
  0x48   : > { %1321 = vmatprep.subr.mxu0 %v1649_v0  ;;  %s1123_s14 = sshll.u32 %s1852_s24, 4  ;;  %s1903_s1 = scalar_lea.hbm %s1986_s4, %s1295_s10  ;;  %s1905_s14 = int_to_ptr.vmem [resolvable:$true] %s1123_s14 }
  0x49   : > { %1322 = vmatpush3.msra.mxu0 %v275_v3  ;;  %s1092_s23 = scalar_lea.sflag [#allocation12], %s1802_s12  ;;  %s1529_s25 = scalar_lea.vmem %s1905_s14, 512 }
  0x4a   : > { %1323 = vmatprep.subr.mxu0 %v1649_v0  ;;  %p1530_p1 = scmp.ne.s32.totalorder %s1905_s14, %s1529_s25 }
  0x4b   : > { %1324 = vmatpush3.msra.mxu0 %v274_v4 }
  0x4c   : > { %1326 = vmatmul.mubr.msk.f32.vlgmr.msra.gmra.mxu0 %vm285_vm1, %v273_v5  ;;  %1343 = vmatprep.subr.mxu0 %v1649_v0  ;;  %p1531_p8 = pnand %p1530_p1, %p1774_p13 }
  0x4d   : > { %1345 = vmatprep.mubr.msk.f32.mxu0 %vm1650_vm0, %v1649_v0 }
  0x4e   : > { %p1532_p10 = pneg %p1531_p8 }
 0x10c   : > { %v355_v7 = vpop.f32.mrf.mxu0 }
 0x10d   : > { %v356_v8 = vadd.f32 %v1275_v6, %v355_v7 }
 0x10e   : > { %v1327_v9 = vpop.f32.mrf.mxu0 }
 0x10f   : > { %359 = vst.msk [vmem:[#allocation2] sm:$0xff] %vm285_vm1, %v356_v8  ;;  %361 = vrot.lane.b32.xlu0 %v356_v8, %s1651_s27  ;;  %s1657_s27 = smov [#allocation11]  }
 0x116   : > { %v409_v13 = vld [vmem:[#allocation2] sm:$0xff] }
 0x181   : > { %v362_v10 = vpop.permute.xlu0 %361 }
 0x182   : > { %364 = vxpose.xlu0.b32.start.end [1/1] (short) (narrow) %v362_v10, 32 }
 0x1fe   : > { %v380_v11 = vpop.trf.xlu0 }
 0x1ff   : > { %397 = vst.msk [vmem:[#allocation3] sm:$0xff] %vm396_vm2, %v380_v11 }
 0x202   : > { %v381_v24 = vpop.trf.xlu0 }
 0x203   : > { %398 = vst.msk [vmem:[#allocation3 + $0x8] sm:$0xff] %vm396_vm2, %v381_v24 }
 0x206   : > { %v412_v12 = vld [vmem:[#allocation3] sm:$0xff]  ;;  %v382_v25 = vpop.trf.xlu0 }
 0x207   : > { %1329 = vmatpush3.msra.mxu1 %v412_v12  ;;  %399 = vst.msk [vmem:[#allocation3 + $0x10] sm:$0xff] %vm396_vm2, %v382_v25 }
 0x208   : > { %1331 = vmatmul.mubr.msk.f32.vlgmr.msra.gmra.mxu1 %vm396_vm2, %v409_v13  ;;  %1333 = vmatprep.subr.mxu1 %v1649_v0 }
 0x209   : > { %1335 = vmatprep.mubr.msk.f32.mxu1 %vm1650_vm0, %v1649_v0 }
 0x20a   : > { %v383_v26 = vpop.trf.xlu0  ;;  %v413_v31 = vld [vmem:[#allocation3 + $0x8] sm:$0xff] }
 0x20b   : > { %400 = vst.msk [vmem:[#allocation3 + $0x18] sm:$0xff] %vm396_vm2, %v383_v26 }
 0x20e   : > { %v414_v32 = vld [vmem:[#allocation3 + $0x10] sm:$0xff] }
 0x212   : > { %v415_v34 = vld [vmem:[#allocation3 + $0x18] sm:$0xff] }
 0x2c8   : > { %v488_v14 = vpop.f32.mrf.mxu1 }
 0x2c9   : > { %v492_v15 = vsel %vm396_vm2, %v488_v14, -inf }
 0x2ca   : > { %493 = vmax.xlane.f32.xlu1 %v492_v15  ;;  %v1332_v16 = vpop.f32.mrf.mxu1 }
 0x2db   : > { %401 = vrot.lane.b32.xlu1 %v356_v8, %s1652_s30  ;;  %s1533_s30 = sshll.u32 %s1657_s27, 4  ;;  %s1534_s30 = int_to_ptr.vmem [resolvable:$false] %s1533_s30 }
 0x2dc   : > { %p1536_p0 = scmp.lt.s32.totalorder %s1905_s14, %s1534_s30 }
 0x2df   : > { %577 = vrot.lane.b32.xlu1 %v409_v13, %s1653_s6 }
 0x353   : > { %v494_v17 = vpop.xlane.xlu1 %493 }
 0x354   : > { %v495_v18 = vsub.f32 %v488_v14, %v494_v17 }
 0x356   : > { %v496_v19 = vmul.f32 1.442695, %v495_v18 }
 0x357   : > { %v402_v20 = vpop.permute.xlu1 %401 }
 0x358   : > { %1459 = vpow2.f32 %v496_v19  ;;  %404 = vst.msk [vmem:[#allocation4] sm:$0xff] %vm285_vm1, %v402_v20 }
 0x35b   : > { %v578_v27 = vpop.permute.xlu1 %577 }
 0x35f   : > { %v1841_v21 = vld [vmem:[#allocation4] sm:$0xff] }
 0x360   : > { %1334 = vmatpush3.msra.mxu1 %v1841_v21 }
 0x361   : > { %1338 = vmatprep.subr.mxu1 %v1649_v0 }
 0x365   : > { %v1460_v22 = vpop.eup %1459 }
 0x366   : > { %v498_v23 = vsel %vm396_vm2, %v1460_v22, 0.0 }
 0x367   : > { %499 = vadd.xlane.f32.xlu1 %v498_v23 }
 0x378   : > { %741 = vrot.lane.b32.xlu1 %v409_v13, %s1654_s7 }
 0x37c   : > { %904 = vrot.lane.b32.xlu1 %v409_v13, %s1655_s8 }
 0x3f0   : > { %v500_v28 = vpop.xlane.xlu1 %499 }
 0x3f1   : > { %1461 = vrcp.f32 %v500_v28 }
 0x3f4   : > { %v742_v33 = vpop.permute.xlu1 %741 }
 0x3f8   : > { %v905_v35 = vpop.permute.xlu1 %904 }
 0x3fe   : > { %v1462_v29 = vpop.eup %1461 }
 0x3ff   : > { %v502_v30 = vmul.f32 %v1462_v29, %v1460_v22 }
 0x401   : > { %503 = vst.msk [vmem:[%s1852_s24] sm:$0xff] %vm396_vm2, %v502_v30  ;;  %1336 = vmatmul.mubr.msk.f32.vlgmr.msra.gmra.mxu1 %vm396_vm2, %v502_v30 }
 0x402   : > { %1339 = vmatpush3.msra.mxu1 %v413_v31  ;;  %1340 = vmatprep.mubr.msk.f32.mxu1 %vm1650_vm0, %v1649_v0 }
 0x403   : > { %1348 = vmatprep.subr.mxu1 %v1649_v0 }
 0x405   : > { %1341 = vmatmul.mubr.msk.f32.vlgmr.msra.gmra.mxu1 %vm396_vm2, %v578_v27 }
 0x406   : > { %1349 = vmatpush3.msra.mxu1 %v414_v32  ;;  %1350 = vmatprep.mubr.msk.f32.mxu1 %vm1650_vm0, %v1649_v0 }
 0x407   : > { %1358 = vmatprep.subr.mxu1 %v1649_v0 }
 0x409   : > { %1351 = vmatmul.mubr.msk.f32.vlgmr.msra.gmra.mxu1 %vm396_vm2, %v742_v33 }
 0x40a   : > { %1359 = vmatpush3.msra.mxu1 %v415_v34  ;;  %1360 = vmatprep.mubr.msk.f32.mxu1 %vm1650_vm0, %v1649_v0 }
 0x40d   : > { %1361 = vmatmul.mubr.msk.f32.vlgmr.msra.gmra.mxu1 %vm396_vm2, %v905_v35 }
 0x4c1   : > { %v1868_v36 = vpop.f32.mrf.mxu1 }
 0x4c3   : > { %v1337_v37 = vpop.f32.mrf.mxu1 }
 0x4c5   : > { %v647_v38 = vpop.f32.mrf.mxu1 }
 0x4c6   : > { %v651_v39 = vsel %vm396_vm2, %v647_v38, -inf }
 0x4c7   : > { %652 = vmax.xlane.f32.xlu0 %v651_v39  ;;  %v1342_v40 = vpop.f32.mrf.mxu1 }
 0x4c9   : > { %v811_v41 = vpop.f32.mrf.mxu1 }
 0x4ca   : > { %v815_v42 = vsel %vm396_vm2, %v811_v41, -inf }
 0x4cb   : > { %816 = vmax.xlane.f32.xlu1 %v815_v42  ;;  %v1352_v43 = vpop.f32.mrf.mxu1 }
 0x4cd   : > { %v974_v44 = vpop.f32.mrf.mxu1 }
 0x4ce   : > { %v978_v45 = vsel %vm396_vm2, %v974_v44, -inf }
 0x4cf   : > { %979 = vmax.xlane.f32.xlu1 %v978_v45  ;;  %v1362_v46 = vpop.f32.mrf.mxu1 }
 0x4dd   : > { %828 = vrot.lane.b32.xlu0 %v1841_v21, %s1654_s7 }
 0x4e0   : > { %665 = vrot.lane.b32.xlu1 %v1841_v21, %s1653_s6  ;;  %s1535_s6 = scalar_lea.vmem %s1534_s30, 1024 }
 0x4e1   : > { %p1537_p2 = scmp.lt.s32.totalorder %s1535_s6, %s1529_s25 }
 0x4e3   : > { %p1538_p3 = por %p1537_p2, %p1536_p0 }
 0x4e5   : > { %p1539_p5 = pnand %p1538_p3, %p1532_p10 }
 0x550   : > { %v653_v47 = vpop.xlane.xlu0 %652 }
 0x551   : > { %v654_v48 = vsub.f32 %v647_v38, %v653_v47 }
 0x553   : > { %v655_v49 = vmul.f32 1.442695, %v654_v48 }
 0x554   : > { %v817_v50 = vpop.xlane.xlu1 %816  ;;  %v829_v5 = vpop.permute.xlu0 %828 }
 0x555   : > { %1463 = vpow2.f32 %v655_v49  ;;  %v818_v51 = vsub.f32 %v811_v41, %v817_v50 }
 0x557   : > { %v819_v52 = vmul.f32 1.442695, %v818_v51 }
 0x558   : > { %v980_v53 = vpop.xlane.xlu1 %979 }
 0x559   : > { %1465 = vpow2.f32 %v819_v52  ;;  %v981_v54 = vsub.f32 %v974_v44, %v980_v53 }
 0x55b   : > { %v982_v55 = vmul.f32 1.442695, %v981_v54 }
 0x55c   : > { %v666_v56 = vpop.permute.xlu1 %665 }
 0x55d   : > { %1467 = vpow2.f32 %v982_v55  ;;  %1344 = vmatpush3.msra.mxu0 %v666_v56 }
 0x55e   : > { %1353 = vmatprep.subr.mxu0 %v1649_v0 }
 0x562   : > { %v1464_v57 = vpop.eup %1463 }
 0x563   : > { %v657_v58 = vsel %vm396_vm2, %v1464_v57, 0.0 }
 0x564   : > { %658 = vadd.xlane.f32.xlu1 %v657_v58 }
 0x566   : > { %v1466_v59 = vpop.eup %1465 }
 0x567   : > { %v821_v60 = vsel %vm396_vm2, %v1466_v59, 0.0 }
 0x568   : > { %822 = vadd.xlane.f32.xlu1 %v821_v60 }
 0x56a   : > { %v1468_v61 = vpop.eup %1467 }
 0x56b   : > { %v984_v62 = vsel %vm396_vm2, %v1468_v61, 0.0 }
 0x56c   : > { %985 = vadd.xlane.f32.xlu1 %v984_v62 }
 0x57d   : > { %991 = vrot.lane.b32.xlu1 %v1841_v21, %s1655_s8 }
 0x5ed   : > { %v659_v63 = vpop.xlane.xlu1 %658 }
 0x5ee   : > { %1469 = vrcp.f32 %v659_v63 }
 0x5f1   : > { %v823_v1 = vpop.xlane.xlu1 %822 }
 0x5f2   : > { %1471 = vrcp.f32 %v823_v1 }
 0x5f5   : > { %v986_v2 = vpop.xlane.xlu1 %985 }
 0x5f6   : > { %1473 = vrcp.f32 %v986_v2 }
 0x5f9   : > { %v992_v8 = vpop.permute.xlu1 %991 }
 0x5fb   : > { %v1470_v3 = vpop.eup %1469 }
 0x5fc   : > { %v661_v4 = vmul.f32 %v1470_v3, %v1464_v57 }
 0x5fe   : > { %1280 = vst.msk [vmem:[%s1852_s24 + $0x8] sm:$0xff] %vm396_vm2, %v661_v4  ;;  %1346 = vmatmul.mubr.msk.f32.vlgmr.msra.gmra.mxu0 %vm396_vm2, %v661_v4 }
 0x5ff   : > { %v1472_v6 = vpop.eup %1471  ;;  %1354 = vmatpush3.msra.mxu0 %v829_v5  ;;  %1355 = vmatprep.mubr.msk.f32.mxu0 %vm1650_vm0, %v1649_v0 }
 0x600   : > { %1363 = vmatprep.subr.mxu0 %v1649_v0  ;;  %v825_v7 = vmul.f32 %v1472_v6, %v1466_v59 }
 0x602   : > { %1283 = vst.msk [vmem:[%s1852_s24 + $0x10] sm:$0xff] %vm396_vm2, %v825_v7  ;;  %1356 = vmatmul.mubr.msk.f32.vlgmr.msra.gmra.mxu0 %vm396_vm2, %v825_v7 }
 0x603   : > { %v1474_v9 = vpop.eup %1473  ;;  %1364 = vmatpush3.msra.mxu0 %v992_v8  ;;  %1365 = vmatprep.mubr.msk.f32.mxu0 %vm1650_vm0, %v1649_v0 }
 0x604   : > { %v988_v10 = vmul.f32 %v1474_v9, %v1468_v61 }
 0x606   : > { %1286 = vst.msk [vmem:[%s1852_s24 + $0x18] sm:$0xff] %vm396_vm2, %v988_v10  ;;  %1366 = vmatmul.mubr.msk.f32.vlgmr.msra.gmra.mxu0 %vm396_vm2, %v988_v10 }
 0x6be   : > { %v737_v11 = vpop.f32.mrf.mxu0 }
 0x6bf   : > { %1068 = vrot.lane.b32.xlu1 %v737_v11, %s1656_s11 }
 0x6c0   : > { %v1347_v0 = vpop.f32.mrf.mxu0 }
 0x6c1   : > { %1542 = shalt.err (!%p1539_p5)
}
 0x6c2   : > { %s1543_s7 = scalar_lea.hbm %s1903_s1, 512  ;;  %s1547_s24 = scalar_lea.hbm %s1986_s4, 1024 }
 0x6c3   : > { %p1544_p7 = scmp.ne.s32.totalorder %s1903_s1, %s1543_s7  ;;  %p1548_p9 = scmp.lt.s32.totalorder %s1903_s1, %s1986_s4 }
 0x6c4   : > { %p1549_p11 = scmp.lt.s32.totalorder %s1547_s24, %s1543_s7 }
 0x6c5   : > { %p1545_p6 = pnand %p1544_p7, %p1774_p13 }
 0x6c6   : > { %p1550_p12 = por %p1549_p11, %p1548_p9 }
 0x6c7   : > { %p1546_p4 = pneg %p1545_p6 }
 0x6c9   : > { %p1551_p1 = pnand %p1550_p12, %p1546_p4 }
 0x6cb   : > { %1554 = shalt.err (!%p1551_p1)
}
 0x6cc   : > { %s1658_s22 = smov 128   ;;  %v900_v12 = vpop.f32.mrf.mxu0  ;;  %s1659_s25 = smov 16   ;;  %vm1080_vm3 = vcmask 130048   ;;  %vm1082_vm4 = vcmask 195584  }
 0x6cd   : > { %1375 = dma.vmem_to_hbm [thread:$0]  (%p1774_p13), %s1905_s14, 512, %s1903_s1, %s1092_s23, %s1658_s22, %s1658_s22, %s1656_s11  }
 0x6ce   : > { %1072 = vrot.lane.b32.xlu0 %v900_v12, %s1659_s25  ;;  %v1357_v13 = vpop.f32.mrf.mxu0  ;;  %s1660_s27 = smov 24   ;;  %s1290_s30 = sshll.u32 %s1635_s18, 7 }
 0x6cf   : > { %s258_s6 = scalar_lea.vmem [#allocation10], %s1271_s21  ;;  %s1939_s1 = scalar_lea.hbm %s1985_s3, %s1290_s30 }
 0x6d0   : > { %v1063_v14 = vpop.f32.mrf.mxu0  ;;  %s1107_s7 = sshll.u32 %s258_s6, 4  ;;  %s1087_s23 = scalar_lea.sflag [#allocation7], %s1802_s12  ;;  %s1108_s7 = int_to_ptr.vmem [resolvable:$true] %s1107_s7 }
 0x6d1   : > { %1076 = vrot.lane.b32.xlu1 %v1063_v14, %s1660_s27  ;;  %s1555_s18 = scalar_lea.vmem %s1108_s7, 128  ;;  %s1661_s21 = smov [#allocation10]  }
 0x6d2   : > { %v1367_v15 = vpop.f32.mrf.mxu0  ;;  %p1556_p8 = scmp.ne.s32.totalorder %s1108_s7, %s1555_s18  ;;  %s1559_s8 = sshll.u32 %s1661_s21, 4  ;;  %s1560_s8 = int_to_ptr.vmem [resolvable:$false] %s1559_s8 }
 0x6d3   : > { %s1561_s9 = scalar_lea.vmem %s1560_s8, 256  ;;  %p1562_p2 = scmp.lt.s32.totalorder %s1108_s7, %s1560_s8 }
 0x6d4   : > { %p1557_p10 = pnand %p1556_p8, %p1774_p13  ;;  %p1563_p3 = scmp.lt.s32.totalorder %s1561_s9, %s1555_s18 }
 0x6d6   : > { %p1558_p0 = pneg %p1557_p10  ;;  %p1564_p5 = por %p1563_p3, %p1562_p2 }
 0x6d8   : > { %p1565_p7 = pnand %p1564_p5, %p1558_p0 }
 0x731   : > { %v1069_v16 = vpop.permute.xlu1 %1068 }
 0x732   : > { %v1079_v18 = vsel %vm396_vm2, %v1868_v36, %v1069_v16 }
 0x740   : > { %v1073_v17 = vpop.permute.xlu0 %1072 }
 0x741   : > { %v1081_v19 = vsel %vm1080_vm3, %v1079_v18, %v1073_v17 }
 0x743   : > { %v1077_v20 = vpop.permute.xlu1 %1076 }
 0x744   : > { %v1083_v21 = vsel %vm1082_vm4, %v1081_v19, %v1077_v20 }
 0x745   : > { %1085 = vst.msk [vmem:[%s258_s6] sm:$0xff] %vm285_vm1, %v1083_v21 }
 0x746   : > { %1568 = shalt.err (!%p1565_p7)
}
 0x747   : > { %s1569_s24 = scalar_lea.hbm %s1939_s1, 128  ;;  %s1573_s29 = scalar_lea.hbm %s1985_s3, 256 }
 0x748   : > { %p1570_p6 = scmp.ne.s32.totalorder %s1939_s1, %s1569_s24  ;;  %p1574_p11 = scmp.lt.s32.totalorder %s1939_s1, %s1985_s3 }
 0x749   : > { %p1575_p12 = scmp.lt.s32.totalorder %s1573_s29, %s1569_s24 }
 0x74a   : > { %p1571_p4 = pnand %p1570_p6, %p1774_p13 }
 0x74b   : > { %p1576_p1 = por %p1575_p12, %p1574_p11 }
 0x74c   : > { %p1572_p9 = pneg %p1571_p4 }
 0x74e   : > { %p1577_p8 = pnand %p1576_p1, %p1572_p9 }
 0x750   : > { %1580 = shalt.err (!%p1577_p8)
}
 0x751   : > { %1374 = dma.vmem_to_hbm [thread:$0]  (%p1774_p13), %s1108_s7, 128, %s1939_s1, %s1087_s23  }
 0x752 PF: > { %s1138_s27 = sand.u32 1, %s1623_s15   ;;  %p2000_p10 = scmp.ne.s32.totalorder %s1992_s26, 0 }
 0x753   : > { %p2001_p0 = scmp.ge.s32.totalorder %s1643_s20, 2  ;;  %s1139_s30 = scalar_lea.sflag [#allocation7], %s1138_s27 }
 0x755   : > { %p1387_p2 = pnand %p2001_p0, %p2000_p10 }
 0x757   : > { %p1388_p3 = pneg %p1387_p2 }
 0x759   : > { %1614 = dma.done.wait (%p1388_p3), %s1139_s30, 128  }
 0x75a   : > { %1616 = vsyncadd (%p1388_p3), %s1139_s30, 4294967168  ;;  %s1148_s6 = scalar_lea.sflag [#allocation12], %s1138_s27 }
 0x75b   : > { %1618 = dma.done.wait (%p1388_p3), %s1148_s6, 512  }
 0x75c   : > { %1620 = vsyncadd (%p1388_p3), %s1148_s6, 4294966784  ;;  %s25_s20 = sadd.s32 1, %s1643_s20   ;;  %s2002_s15 = smov %s1627_s16 }
 0x75d   : > { %p22_p5 = scmp.ge.s32.totalorder %s25_s20, 4   ;;  %s2003_s16 = smov %s1631_s17 }
 0x75e   : > { %s2004_s17 = smov %s1783_s28  ;;  %s2005_s18 = smov %s1639_s19 }
 0x75f   : > { %s2006_s19 = smov %s2008_s5  ;;  %24 = sbr.rel (!%p22_p5) target bundleno = 11 (0xb), region = 108 }
 0x764   :  { %1153 = vsyncpa [#allocation6], 1 }
 0x765   :  { %1155 = vsyncpa [#allocation6 + $0x1], 1 }
 0x766   :  { %1156 = vsyncpa [#allocation9], 1 }
 0x767   :  { %1157 = vsyncpa [#allocation7], 1 }
 0x768   :  { %1159 = vsyncpa [#allocation7 + $0x1], 1 }
 0x769   :  { %1160 = vsyncpa [#allocation12], 1 }
 0x76a   :  { %1162 = vsyncpa [#allocation12 + $0x1], 1 }

</bundles_post_ra>
